<compile_context>
chip_gen: v5e
topology: v5e:2x2
jax: 0.10.0
libtpu: 0.0.40
codegen_flags: <defaults>
</compile_context>

<pallas_src>
import jax
import jax.numpy as jnp
import numpy as np
from jax.experimental import pallas as pl
from jax.experimental.pallas import tpu as pltpu

EPS = 1e-5


def _se_bottleneck_kernel(x_ref, w1_ref, b1_ref, w2_ref, b2_ref, w3_ref, b3_ref,
                          fc1w_ref, fc1b_ref, fc2w_ref, fc2b_ref,
                          seg_ref, poolt_ref, mask_l_ref, mask_r_ref, out_ref):
    """One batch-tile per grid step; activations are (channels, nb*L).

    x_ref    : (Cin, NBL)   bf16  folded input (also the residual; Cin == Cout)
    w1_ref   : (P, Cin)     bf16  conv1 weight (bn1 scale folded)
    w2_ref   : (P, 3P)      bf16  conv2 taps flattened [left|center|right] (bn2 folded)
    w3_ref   : (Cout, P)    bf16  conv3 weight (bn3 scale folded)
    b*_ref   : (C, 1)       f32   folded BatchNorm biases
    fc1w_ref : (Cr, Cout)   f32   fc1 weight with 1/L folded;  fc1b: (Cr, 1)
    fc2w_ref : (Cout, Cr)   f32;  fc2b: (Cout, 1)
    seg_ref  : (nb, NBL)    bf16  1.0 where lane column belongs to batch row
    poolt_ref: (NBL, nb)    bf16  seg.T (0/1); 1/L lives in fc1w
    mask_*   : (1, NBL)     f32   conv2 boundary masks
    out_ref  : (Cout, NBL)  f32   lane-dense output
    """
    f32 = jnp.float32
    bf16 = jnp.bfloat16
    xb = x_ref[...]                                            # (Cin, NBL) bf16

    # ---- conv1 (k=1, bn1 scale folded) -> bias -> relu ----
    h1 = jnp.dot(w1_ref[...], xb, preferred_element_type=f32)
    h1 = jnp.maximum(h1 + b1_ref[...], 0.0)                    # (P, NBL) f32

    # ---- conv2 (k=3, pad=1, stride=1): rolls + f32 edge masks, one K=3P matmul
    nbl = h1.shape[1]
    # left[:, c] = h1[:, c-1] (0 at segment starts); right[:, c] = h1[:, c+1]
    left = pltpu.roll(h1, shift=1, axis=1) * mask_l_ref[...]
    right = pltpu.roll(h1, shift=nbl - 1, axis=1) * mask_r_ref[...]
    taps = jnp.concatenate([left, h1, right], axis=0).astype(bf16)   # (3P, NBL)
    h2 = jnp.dot(w2_ref[...], taps, preferred_element_type=f32)
    h2 = jnp.maximum(h2 + b2_ref[...], 0.0)                    # (P, NBL) f32

    # ---- conv3 (k=1, bn3 scale folded) -> bias  (= original_out) ----
    h3 = jnp.dot(w3_ref[...], h2.astype(bf16), preferred_element_type=f32)
    h3 = h3 + b3_ref[...]                                      # (Cout, NBL) f32

    # ---- SE branch: segmented avg-pool -> fc1 -> relu -> fc2 -> sigmoid ----
    se = jnp.dot(h3.astype(bf16), poolt_ref[...],
                 preferred_element_type=f32)                   # (Cout, nb)
    z = jnp.maximum(jnp.dot(fc1w_ref[...], se, preferred_element_type=f32)
                    + fc1b_ref[...], 0.0)                      # (Cr, nb)
    g = jax.nn.sigmoid(jnp.dot(fc2w_ref[...], z, preferred_element_type=f32)
                       + fc2b_ref[...])                        # (Cout, nb)
    gate = jnp.dot(g.astype(bf16), seg_ref[...],
                   preferred_element_type=f32)                 # (Cout, NBL)

    # ---- gate * original_out + residual -> final relu (lane-dense store) ----
    out_ref[...] = jnp.maximum(gate * h3 + xb.astype(f32), 0.0)


def _physical_vmem_bytes():
    try:
        return int(pltpu.get_tpu_info().vmem_capacity_bytes)
    except Exception:
        return 64 * 1024 * 1024        # conservative (v7x per-TC VMEM)


def _working_set_bytes(nb, L, cin, planes, cout, cr, const_bufs):
    """Rough per-step VMEM footprint (moving blocks double-buffered)."""
    nbl = nb * L
    moving = 2 * cin * nbl * 2 + 2 * cout * nbl * 4            # x bf16 + out f32
    consts = const_bufs * (
        (planes * cin + planes * 3 * planes + cout * planes) * 2   # conv weights bf16
        + (2 * planes + 2 * cout + cr) * 4                          # folded biases f32
        + (cr * cout + cout * cr) * 4                               # fc weights f32
        + 2 * nb * nbl * 2                                          # seg + poolt bf16
        + 2 * nbl * 4)                                              # edge masks f32
    inter = (5 * planes * nbl * 4      # h1, left, right, h2, slack (f32)
             + 3 * planes * nbl * 2    # taps bf16
             + 2 * cout * nbl * 4      # h3, gate f32
             + cout * nbl * 2)         # h3 bf16 copy
    return moving + consts + inter


def _choose_batch_tile(B, L, cin, planes, cout, cr, budget, const_bufs):
    """Largest lane-aligned batch tile fitting the VMEM budget.

    Prefers an even grid of >= 2 steps (splits across v7x's two TensorCores
    and keeps a couple of steps for pipelining on single-TC chips); within a
    preference class, takes the largest tile (fewest grid steps).
    """
    divs = [d for d in range(1, B + 1) if B % d == 0]
    cands = [d for d in divs if (d * L) % 128 == 0 or d == B]
    fit = [d for d in cands
           if _working_set_bytes(d, L, cin, planes, cout, cr, const_bufs) <= budget]
    if not fit:
        fit = [min(cands)]
    even = [d for d in fit if (B // d) >= 2 and (B // d) % 2 == 0]
    multi = [d for d in fit if (B // d) >= 2]
    return max(even or multi or fit)


def _build_specs(nb, nbl, cin, planes, cout, cr, single_buffer_consts):
    def const(shape):
        if single_buffer_consts:
            # Constant index map -> never re-DMA'd; single buffer frees VMEM.
            return pl.BlockSpec(shape, lambda *_: (0,) * len(shape),
                                pipeline_mode=pl.Buffered(1))
        return pl.BlockSpec(shape, lambda *_: (0,) * len(shape))

    # x / out keep the default double-buffering (only blocks that move per step;
    # raise to pl.Buffered(3) only if DMA is ever exposed in profiles).
    in_specs = [
        pl.BlockSpec((cin, nbl), lambda i: (0, i)),      # x (also residual)
        const((planes, cin)),                            # w1 (bn1 scale folded)
        const((planes, 1)),                              # bn1 bias
        const((planes, 3 * planes)),                     # w2 flat (bn2 folded)
        const((planes, 1)),                              # bn2 bias
        const((cout, planes)),                           # w3 (bn3 folded)
        const((cout, 1)),                                # bn3 bias
        const((cr, cout)),                               # fc1 w (1/L folded)
        const((cr, 1)),                                  # fc1 b
        const((cout, cr)),                               # fc2 w
        const((cout, 1)),                                # fc2 b
        const((nb, nbl)),                                # seg (gate broadcast)
        const((nbl, nb)),                                # poolt (avg-pool 0/1)
        const((1, nbl)),                                 # conv2 left-edge mask
        const((1, nbl)),                                 # conv2 right-edge mask
    ]
    out_spec = pl.BlockSpec((cout, nbl), lambda i: (0, i))
    return in_specs, out_spec


def se_bottleneck(x, params):
    """x: (B, Cin, L) float32, NCL layout (matches PyTorch Conv1d)."""
    B, cin, L = x.shape
    planes = params["w1"].shape[0]
    cout = params["w3"].shape[0]                     # = planes * 4
    cr = params["fc1w"].shape[0]
    assert cin == cout, "downsample=None requires inplanes == planes * 4"

    f32, bf16 = jnp.float32, jnp.bfloat16

    # Fold inference BatchNorm into per-channel scale/bias; fold the scale
    # into the conv weights (f32 math, then cast to bf16).
    def fold(g, be, m, v):
        s = (g / jnp.sqrt(v + EPS)).astype(f32)
        return s, (be - m * s).reshape(-1, 1).astype(f32)

    s1, b1 = fold(params["g1"], params["be1"], params["m1"], params["v1"])
    s2, b2 = fold(params["g2"], params["be2"], params["m2"], params["v2"])
    s3, b3 = fold(params["g3"], params["be3"], params["m3"], params["v3"])

    w1 = (params["w1"][:, :, 0].astype(f32) * s1[:, None]).astype(bf16)   # (P, Cin)
    # (O, I, K) -> scale per O -> (O, K, I) -> (O, 3I): row block k of the taps
    # matrix holds the k-th shifted copy of h1 (left / center / right).
    w2 = (params["w2"].astype(f32) * s2[:, None, None]).transpose(0, 2, 1)
    w2 = w2.reshape(planes, 3 * planes).astype(bf16)                       # (P, 3P)
    w3 = (params["w3"][:, :, 0].astype(f32) * s3[:, None]).astype(bf16)   # (Cout, P)
    fc1w = params["fc1w"].astype(f32) / float(L)     # global-avg-pool 1/L folded (f32, exact wrt mean)
    fc2w = params["fc2w"].astype(f32)
    col = lambda v: v.reshape(-1, 1).astype(f32)

    vmem_phys = _physical_vmem_bytes()
    budget = int(vmem_phys * 0.45)                   # working-set headroom
    vmem_limit = min(int(vmem_phys * 0.70), 100 * 1024 * 1024)

    nb = _choose_batch_tile(B, L, cin, planes, cout, cr, budget, const_bufs=1)
    nbl = nb * L
    n = B * L

    # Fold batch into the lane axis: (B, C, L) -> (C, B*L).
    x2d = jnp.transpose(x, (1, 0, 2)).reshape(cin, n).astype(bf16)

    # Constant per-tile segment matrices (same for every grid step) + conv2 masks.
    c_idx = np.arange(nbl)
    seg_np = (c_idx[None, :] // L == np.arange(nb)[:, None]).astype(np.float32)
    seg = jnp.asarray(seg_np, dtype=bf16)                      # (nb, nbl)
    poolt = jnp.asarray(seg_np.T, dtype=bf16)                  # (nbl, nb) 0/1
    mask_l = jnp.asarray((c_idx % L != 0).astype(np.float32)[None, :])
    mask_r = jnp.asarray((c_idx % L != L - 1).astype(np.float32)[None, :])

    operands = (x2d, w1, b1, w2, b2, w3, b3,
                fc1w, col(params["fc1b"]), fc2w, col(params["fc2b"]),
                seg, poolt, mask_l, mask_r)

    def run(single_buffer_consts):
        in_specs, out_spec = _build_specs(nb, nbl, cin, planes, cout, cr,
                                          single_buffer_consts)
        grid_spec = pltpu.PrefetchScalarGridSpec(
            num_scalar_prefetch=0,
            grid=(B // nb,),
            in_specs=in_specs,
            out_specs=out_spec)
        return pl.pallas_call(
            _se_bottleneck_kernel,
            out_shape=jax.ShapeDtypeStruct((cout, n), jnp.float32),
            grid_spec=grid_spec,
            compiler_params=pltpu.CompilerParams(
                dimension_semantics=("parallel",),
                vmem_limit_bytes=vmem_limit),
        )(*operands)

    try:
        out2d = run(single_buffer_consts=True)      # constants single-buffered
    except Exception:
        out2d = run(single_buffer_consts=False)     # fallback: default buffering

    return out2d.reshape(cout, B, L).transpose(1, 0, 2)        # (B, Cout, L)


def ref_forward(x, p):
    """Pure-JAX f32 reference of Bottleneck.forward (inference semantics)."""
    def conv1d(inp, w, pad):
        return jax.lax.conv_general_dilated(
            inp, w, window_strides=(1,), padding=[(pad, pad)],
            dimension_numbers=("NCH", "OIH", "NCH"))

    def bn(h, g, be, m, v):
        inv = g / jnp.sqrt(v + EPS)
        return h * inv[None, :, None] + (be - m * inv)[None, :, None]

    out = jax.nn.relu(bn(conv1d(x, p["w1"], 0), p["g1"], p["be1"], p["m1"], p["v1"]))
    out = jax.nn.relu(bn(conv1d(out, p["w2"], 1), p["g2"], p["be2"], p["m2"], p["v2"]))
    out = bn(conv1d(out, p["w3"], 0), p["g3"], p["be3"], p["m3"], p["v3"])
    orig = out
    se = jnp.mean(out, axis=2, keepdims=True)
    z = jax.nn.relu(jnp.einsum("oc,bcl->bol", p["fc1w"], se)
                    + p["fc1b"][None, :, None])
    g = jax.nn.sigmoid(jnp.einsum("oc,bcl->bol", p["fc2w"], z)
                       + p["fc2b"][None, :, None])
    return jax.nn.relu(g * orig + x)


def make_params(key, planes):
    inpl = planes * 4
    cr = round(planes / 4)
    ks = jax.random.split(key, 16)
    f32 = jnp.float32

    def bn_params(k0, k1, k2, k3, c):
        return (1.0 + 0.1 * jax.random.normal(k0, (c,), f32),
                0.1 * jax.random.normal(k1, (c,), f32),
                0.1 * jax.random.normal(k2, (c,), f32),
                jax.random.uniform(k3, (c,), f32, 0.5, 1.5))

    g1, be1, m1, v1 = bn_params(ks[0], ks[1], ks[2], ks[3], planes)
    g2, be2, m2, v2 = bn_params(ks[4], ks[5], ks[6], ks[7], planes)
    g3, be3, m3, v3 = bn_params(ks[8], ks[9], ks[10], ks[11], inpl)
    return {
        "w1": 0.15 * jax.random.normal(ks[12], (planes, inpl, 1), f32),
        "w2": 0.15 * jax.random.normal(ks[13], (planes, planes, 3), f32),
        "w3": 0.15 * jax.random.normal(ks[14], (inpl, planes, 1), f32),
        "g1": g1, "be1": be1, "m1": m1, "v1": v1,
        "g2": g2, "be2": be2, "m2": m2, "v2": v2,
        "g3": g3, "be3": be3, "m3": m3, "v3": v3,
        "fc1w": 0.3 * jax.random.normal(ks[15], (cr, inpl), f32),
        "fc1b": jnp.full((cr,), 0.05, f32),
        "fc2w": 0.3 * jax.random.normal(jax.random.fold_in(key, 99), (inpl, cr), f32),
        "fc2b": jnp.full((inpl,), -0.05, f32),
    }


if __name__ == "__main__":
    key = jax.random.PRNGKey(0)
    kx, kp = jax.random.split(key)

    B, planes, L = 4, 8, 16          # inplanes = planes * 4 = 32; stride=1, downsample=None
    x = jax.random.normal(kx, (B, planes * 4, L), jnp.float32)
    params = make_params(kp, planes)

    out = jax.block_until_ready(se_bottleneck(x, params))
    ref = jax.block_until_ready(ref_forward(x, params))

    # bf16 matmul operands (f32 accumulation) vs a pure-f32 reference.
    np.testing.assert_allclose(np.asarray(out), np.asarray(ref),
                               rtol=2e-2, atol=2e-2)
    print("KERNEL_OK")
</pallas_src>

<mosaic_0001>
module attributes {stable_mosaic.version = 11 : i64} {
  func.func @_se_bottleneck_kernel(%arg0: i32, %arg1: memref<32x64xbf16, #tpu.memory_space<vmem>>, %arg2: memref<8x32xbf16, #tpu.memory_space<vmem>>, %arg3: memref<8x1xf32, #tpu.memory_space<vmem>>, %arg4: memref<8x24xbf16, #tpu.memory_space<vmem>>, %arg5: memref<8x1xf32, #tpu.memory_space<vmem>>, %arg6: memref<32x8xbf16, #tpu.memory_space<vmem>>, %arg7: memref<32x1xf32, #tpu.memory_space<vmem>>, %arg8: memref<2x32xf32, #tpu.memory_space<vmem>>, %arg9: memref<2x1xf32, #tpu.memory_space<vmem>>, %arg10: memref<32x2xf32, #tpu.memory_space<vmem>>, %arg11: memref<32x1xf32, #tpu.memory_space<vmem>>, %arg12: memref<4x64xbf16, #tpu.memory_space<vmem>>, %arg13: memref<64x4xbf16, #tpu.memory_space<vmem>>, %arg14: memref<1x64xf32, #tpu.memory_space<vmem>>, %arg15: memref<1x64xf32, #tpu.memory_space<vmem>>, %arg16: memref<32x64xf32, #tpu.memory_space<vmem>>) attributes {dimension_semantics = [#tpu.dimension_semantics<parallel>], iteration_bounds = array<i64: 1>, scalar_prefetch = 0 : i64, scratch_operands = 0 : i64, tpu.core_type = #tpu.core_type<tc>, window_params = [{transform_indices = @transform_0, window_bounds = array<i64: 32, 64>}, {pipeline_mode = #tpu.pipeline_mode<synchronous>, transform_indices = @transform_1, window_bounds = array<i64: 8, 32>}, {pipeline_mode = #tpu.pipeline_mode<synchronous>, transform_indices = @transform_2, window_bounds = array<i64: 8, 1>}, {pipeline_mode = #tpu.pipeline_mode<synchronous>, transform_indices = @transform_3, window_bounds = array<i64: 8, 24>}, {pipeline_mode = #tpu.pipeline_mode<synchronous>, transform_indices = @transform_4, window_bounds = array<i64: 8, 1>}, {pipeline_mode = #tpu.pipeline_mode<synchronous>, transform_indices = @transform_5, window_bounds = array<i64: 32, 8>}, {pipeline_mode = #tpu.pipeline_mode<synchronous>, transform_indices = @transform_6, window_bounds = array<i64: 32, 1>}, {pipeline_mode = #tpu.pipeline_mode<synchronous>, transform_indices = @transform_7, window_bounds = array<i64: 2, 32>}, {pipeline_mode = #tpu.pipeline_mode<synchronous>, transform_indices = @transform_8, window_bounds = array<i64: 2, 1>}, {pipeline_mode = #tpu.pipeline_mode<synchronous>, transform_indices = @transform_9, window_bounds = array<i64: 32, 2>}, {pipeline_mode = #tpu.pipeline_mode<synchronous>, transform_indices = @transform_10, window_bounds = array<i64: 32, 1>}, {pipeline_mode = #tpu.pipeline_mode<synchronous>, transform_indices = @transform_11, window_bounds = array<i64: 4, 64>}, {pipeline_mode = #tpu.pipeline_mode<synchronous>, transform_indices = @transform_12, window_bounds = array<i64: 64, 4>}, {pipeline_mode = #tpu.pipeline_mode<synchronous>, transform_indices = @transform_13, window_bounds = array<i64: 1, 64>}, {pipeline_mode = #tpu.pipeline_mode<synchronous>, transform_indices = @transform_14, window_bounds = array<i64: 1, 64>}, {transform_indices = @transform_15, window_bounds = array<i64: 32, 64>}]} {
    %c0 = arith.constant 0 : index
    %c0_0 = arith.constant 0 : index
    %0 = vector.load %arg1[%c0, %c0_0] : memref<32x64xbf16, #tpu.memory_space<vmem>>, vector<32x64xbf16>
    %c0_1 = arith.constant 0 : index
    %c0_2 = arith.constant 0 : index
    %1 = vector.load %arg2[%c0_1, %c0_2] : memref<8x32xbf16, #tpu.memory_space<vmem>>, vector<8x32xbf16>
    %cst = arith.constant dense<0.000000e+00> : vector<8x64xf32>
    %2 = tpu.matmul %1, %0, %cst {dimension_numbers = #tpu.dot_dimension_numbers<[1], [0], [0], [1], [0, 0, 1, 1], [], []>} : vector<8x32xbf16>, vector<32x64xbf16>, vector<8x64xf32> -> vector<8x64xf32>
    %c0_3 = arith.constant 0 : index
    %c0_4 = arith.constant 0 : index
    %3 = vector.load %arg3[%c0_3, %c0_4] : memref<8x1xf32, #tpu.memory_space<vmem>>, vector<8x1xf32>
    %4 = vector.broadcast %3 : vector<8x1xf32> to vector<8x64xf32>
    %5 = arith.addf %2, %4 : vector<8x64xf32>
    %cst_5 = arith.constant 0.000000e+00 : f32
    %6 = vector.broadcast %cst_5 : f32 to vector<8x64xf32>
    %7 = arith.maximumf %5, %6 : vector<8x64xf32>
    %c1_i32 = arith.constant 1 : i32
    %8 = tpu.dynamic_rotate %7 by %c1_i32 dim 1 : vector<8x64xf32>, i32 -> vector<8x64xf32>
    %c0_6 = arith.constant 0 : index
    %c0_7 = arith.constant 0 : index
    %9 = vector.load %arg14[%c0_6, %c0_7] : memref<1x64xf32, #tpu.memory_space<vmem>>, vector<1x64xf32>
    %10 = vector.broadcast %9 : vector<1x64xf32> to vector<8x64xf32>
    %11 = arith.mulf %8, %10 : vector<8x64xf32>
    %c63_i32 = arith.constant 63 : i32
    %12 = tpu.dynamic_rotate %7 by %c63_i32 dim 1 : vector<8x64xf32>, i32 -> vector<8x64xf32>
    %c0_8 = arith.constant 0 : index
    %c0_9 = arith.constant 0 : index
    %13 = vector.load %arg15[%c0_8, %c0_9] : memref<1x64xf32, #tpu.memory_space<vmem>>, vector<1x64xf32>
    %14 = vector.broadcast %13 : vector<1x64xf32> to vector<8x64xf32>
    %15 = arith.mulf %12, %14 : vector<8x64xf32>
    %16 = tpu.concatenate %11, %7, %15 in 0 : vector<8x64xf32>, vector<8x64xf32>, vector<8x64xf32> -> vector<24x64xf32>
    %17 = arith.truncf %16 : vector<24x64xf32> to vector<24x64xbf16>
    %c0_10 = arith.constant 0 : index
    %c0_11 = arith.constant 0 : index
    %18 = vector.load %arg4[%c0_10, %c0_11] : memref<8x24xbf16, #tpu.memory_space<vmem>>, vector<8x24xbf16>
    %cst_12 = arith.constant dense<0.000000e+00> : vector<8x64xf32>
    %19 = tpu.matmul %18, %17, %cst_12 {dimension_numbers = #tpu.dot_dimension_numbers<[1], [0], [0], [1], [0, 0, 1, 1], [], []>} : vector<8x24xbf16>, vector<24x64xbf16>, vector<8x64xf32> -> vector<8x64xf32>
    %c0_13 = arith.constant 0 : index
    %c0_14 = arith.constant 0 : index
    %20 = vector.load %arg5[%c0_13, %c0_14] : memref<8x1xf32, #tpu.memory_space<vmem>>, vector<8x1xf32>
    %21 = vector.broadcast %20 : vector<8x1xf32> to vector<8x64xf32>
    %22 = arith.addf %19, %21 : vector<8x64xf32>
    %cst_15 = arith.constant 0.000000e+00 : f32
    %23 = vector.broadcast %cst_15 : f32 to vector<8x64xf32>
    %24 = arith.maximumf %22, %23 : vector<8x64xf32>
    %c0_16 = arith.constant 0 : index
    %c0_17 = arith.constant 0 : index
    %25 = vector.load %arg6[%c0_16, %c0_17] : memref<32x8xbf16, #tpu.memory_space<vmem>>, vector<32x8xbf16>
    %26 = arith.truncf %24 : vector<8x64xf32> to vector<8x64xbf16>
    %cst_18 = arith.constant dense<0.000000e+00> : vector<32x64xf32>
    %27 = tpu.matmul %25, %26, %cst_18 {dimension_numbers = #tpu.dot_dimension_numbers<[1], [0], [0], [1], [0, 0, 1, 1], [], []>} : vector<32x8xbf16>, vector<8x64xbf16>, vector<32x64xf32> -> vector<32x64xf32>
    %c0_19 = arith.constant 0 : index
    %c0_20 = arith.constant 0 : index
    %28 = vector.load %arg7[%c0_19, %c0_20] : memref<32x1xf32, #tpu.memory_space<vmem>>, vector<32x1xf32>
    %29 = vector.broadcast %28 : vector<32x1xf32> to vector<32x64xf32>
    %30 = arith.addf %27, %29 : vector<32x64xf32>
    %31 = arith.truncf %30 : vector<32x64xf32> to vector<32x64xbf16>
    %c0_21 = arith.constant 0 : index
    %c0_22 = arith.constant 0 : index
    %32 = vector.load %arg13[%c0_21, %c0_22] : memref<64x4xbf16, #tpu.memory_space<vmem>>, vector<64x4xbf16>
    %cst_23 = arith.constant dense<0.000000e+00> : vector<32x4xf32>
    %33 = tpu.matmul %31, %32, %cst_23 {dimension_numbers = #tpu.dot_dimension_numbers<[1], [0], [0], [1], [0, 0, 1, 1], [], []>} : vector<32x64xbf16>, vector<64x4xbf16>, vector<32x4xf32> -> vector<32x4xf32>
    %c0_24 = arith.constant 0 : index
    %c0_25 = arith.constant 0 : index
    %34 = vector.load %arg8[%c0_24, %c0_25] : memref<2x32xf32, #tpu.memory_space<vmem>>, vector<2x32xf32>
    %cst_26 = arith.constant dense<0.000000e+00> : vector<2x4xf32>
    %35 = tpu.matmul %34, %33, %cst_26 {dimension_numbers = #tpu.dot_dimension_numbers<[1], [0], [0], [1], [0, 0, 1, 1], [], []>} : vector<2x32xf32>, vector<32x4xf32>, vector<2x4xf32> -> vector<2x4xf32>
    %c0_27 = arith.constant 0 : index
    %c0_28 = arith.constant 0 : index
    %36 = vector.load %arg9[%c0_27, %c0_28] : memref<2x1xf32, #tpu.memory_space<vmem>>, vector<2x1xf32>
    %37 = vector.broadcast %36 : vector<2x1xf32> to vector<2x4xf32>
    %38 = arith.addf %35, %37 : vector<2x4xf32>
    %cst_29 = arith.constant 0.000000e+00 : f32
    %39 = vector.broadcast %cst_29 : f32 to vector<2x4xf32>
    %40 = arith.maximumf %38, %39 : vector<2x4xf32>
    %c0_30 = arith.constant 0 : index
    %c0_31 = arith.constant 0 : index
    %41 = vector.load %arg10[%c0_30, %c0_31] : memref<32x2xf32, #tpu.memory_space<vmem>>, vector<32x2xf32>
    %cst_32 = arith.constant dense<0.000000e+00> : vector<32x4xf32>
    %42 = tpu.matmul %41, %40, %cst_32 {dimension_numbers = #tpu.dot_dimension_numbers<[1], [0], [0], [1], [0, 0, 1, 1], [], []>} : vector<32x2xf32>, vector<2x4xf32>, vector<32x4xf32> -> vector<32x4xf32>
    %c0_33 = arith.constant 0 : index
    %c0_34 = arith.constant 0 : index
    %43 = vector.load %arg11[%c0_33, %c0_34] : memref<32x1xf32, #tpu.memory_space<vmem>>, vector<32x1xf32>
    %44 = vector.broadcast %43 : vector<32x1xf32> to vector<32x4xf32>
    %45 = arith.addf %42, %44 : vector<32x4xf32>
    %46 = arith.negf %45 : vector<32x4xf32>
    %47 = math.exp %46 : vector<32x4xf32>
    %cst_35 = arith.constant 1.000000e+00 : f32
    %48 = vector.broadcast %cst_35 : f32 to vector<32x4xf32>
    %49 = arith.addf %48, %47 : vector<32x4xf32>
    %50 = arith.divf %48, %49 : vector<32x4xf32>
    %51 = arith.truncf %50 : vector<32x4xf32> to vector<32x4xbf16>
    %c0_36 = arith.constant 0 : index
    %c0_37 = arith.constant 0 : index
    %52 = vector.load %arg12[%c0_36, %c0_37] : memref<4x64xbf16, #tpu.memory_space<vmem>>, vector<4x64xbf16>
    %cst_38 = arith.constant dense<0.000000e+00> : vector<32x64xf32>
    %53 = tpu.matmul %51, %52, %cst_38 {dimension_numbers = #tpu.dot_dimension_numbers<[1], [0], [0], [1], [0, 0, 1, 1], [], []>} : vector<32x4xbf16>, vector<4x64xbf16>, vector<32x64xf32> -> vector<32x64xf32>
    %54 = arith.mulf %53, %30 : vector<32x64xf32>
    %55 = arith.extf %0 : vector<32x64xbf16> to vector<32x64xf32>
    %56 = arith.addf %54, %55 : vector<32x64xf32>
    %cst_39 = arith.constant 0.000000e+00 : f32
    %57 = vector.broadcast %cst_39 : f32 to vector<32x64xf32>
    %58 = arith.maximumf %56, %57 : vector<32x64xf32>
    %c0_40 = arith.constant 0 : index
    %c0_41 = arith.constant 0 : index
    %59 = vector.load %arg16[%c0_40, %c0_41] : memref<32x64xf32, #tpu.memory_space<vmem>>, vector<32x64xf32>
    tpu.vector_store %arg16[%c0_40, %c0_41], %58 {strides = array<i32>} : memref<32x64xf32, #tpu.memory_space<vmem>>, vector<32x64xf32>,
    return
  }
  func.func @transform_0(%arg0: i32) -> (i32, i32) {
    %c0_i32 = arith.constant 0 : i32
    %c0_i32_0 = arith.constant 0 : i32
    return %c0_i32, %arg0 : i32, i32
  }
  func.func @transform_1(%arg0: i32) -> (i32, i32) {
    %c0_i32 = arith.constant 0 : i32
    %c0_i32_0 = arith.constant 0 : i32
    %c0_i32_1 = arith.constant 0 : i32
    return %c0_i32, %c0_i32_0 : i32, i32
  }
  func.func @transform_2(%arg0: i32) -> (i32, i32) {
    %c0_i32 = arith.constant 0 : i32
    %c0_i32_0 = arith.constant 0 : i32
    %c0_i32_1 = arith.constant 0 : i32
    return %c0_i32, %c0_i32_0 : i32, i32
  }
  func.func @transform_3(%arg0: i32) -> (i32, i32) {
    %c0_i32 = arith.constant 0 : i32
    %c0_i32_0 = arith.constant 0 : i32
    %c0_i32_1 = arith.constant 0 : i32
    return %c0_i32, %c0_i32_0 : i32, i32
  }
  func.func @transform_4(%arg0: i32) -> (i32, i32) {
    %c0_i32 = arith.constant 0 : i32
    %c0_i32_0 = arith.constant 0 : i32
    %c0_i32_1 = arith.constant 0 : i32
    return %c0_i32, %c0_i32_0 : i32, i32
  }
  func.func @transform_5(%arg0: i32) -> (i32, i32) {
    %c0_i32 = arith.constant 0 : i32
    %c0_i32_0 = arith.constant 0 : i32
    %c0_i32_1 = arith.constant 0 : i32
    return %c0_i32, %c0_i32_0 : i32, i32
  }
  func.func @transform_6(%arg0: i32) -> (i32, i32) {
    %c0_i32 = arith.constant 0 : i32
    %c0_i32_0 = arith.constant 0 : i32
    %c0_i32_1 = arith.constant 0 : i32
    return %c0_i32, %c0_i32_0 : i32, i32
  }
  func.func @transform_7(%arg0: i32) -> (i32, i32) {
    %c0_i32 = arith.constant 0 : i32
    %c0_i32_0 = arith.constant 0 : i32
    %c0_i32_1 = arith.constant 0 : i32
    return %c0_i32, %c0_i32_0 : i32, i32
  }
  func.func @transform_8(%arg0: i32) -> (i32, i32) {
    %c0_i32 = arith.constant 0 : i32
    %c0_i32_0 = arith.constant 0 : i32
    %c0_i32_1 = arith.constant 0 : i32
    return %c0_i32, %c0_i32_0 : i32, i32
  }
  func.func @transform_9(%arg0: i32) -> (i32, i32) {
    %c0_i32 = arith.constant 0 : i32
    %c0_i32_0 = arith.constant 0 : i32
    %c0_i32_1 = arith.constant 0 : i32
    return %c0_i32, %c0_i32_0 : i32, i32
  }
  func.func @transform_10(%arg0: i32) -> (i32, i32) {
    %c0_i32 = arith.constant 0 : i32
    %c0_i32_0 = arith.constant 0 : i32
    %c0_i32_1 = arith.constant 0 : i32
    return %c0_i32, %c0_i32_0 : i32, i32
  }
  func.func @transform_11(%arg0: i32) -> (i32, i32) {
    %c0_i32 = arith.constant 0 : i32
    %c0_i32_0 = arith.constant 0 : i32
    %c0_i32_1 = arith.constant 0 : i32
    return %c0_i32, %c0_i32_0 : i32, i32
  }
  func.func @transform_12(%arg0: i32) -> (i32, i32) {
    %c0_i32 = arith.constant 0 : i32
    %c0_i32_0 = arith.constant 0 : i32
    %c0_i32_1 = arith.constant 0 : i32
    return %c0_i32, %c0_i32_0 : i32, i32
  }
  func.func @transform_13(%arg0: i32) -> (i32, i32) {
    %c0_i32 = arith.constant 0 : i32
    %c0_i32_0 = arith.constant 0 : i32
    %c0_i32_1 = arith.constant 0 : i32
    return %c0_i32, %c0_i32_0 : i32, i32
  }
  func.func @transform_14(%arg0: i32) -> (i32, i32) {
    %c0_i32 = arith.constant 0 : i32
    %c0_i32_0 = arith.constant 0 : i32
    %c0_i32_1 = arith.constant 0 : i32
    return %c0_i32, %c0_i32_0 : i32, i32
  }
  func.func @transform_15(%arg0: i32) -> (i32, i32) {
    %c0_i32 = arith.constant 0 : i32
    %c0_i32_0 = arith.constant 0 : i32
    return %c0_i32, %arg0 : i32, i32
  }
}

module attributes {stable_mosaic.version = 11 : i64} {
  func.func @_se_bottleneck_kernel(%arg0: i32, %arg1: memref<32x64xbf16, #tpu.memory_space<vmem>>, %arg2: memref<8x32xbf16, #tpu.memory_space<vmem>>, %arg3: memref<8x1xf32, #tpu.memory_space<vmem>>, %arg4: memref<8x24xbf16, #tpu.memory_space<vmem>>, %arg5: memref<8x1xf32, #tpu.memory_space<vmem>>, %arg6: memref<32x8xbf16, #tpu.memory_space<vmem>>, %arg7: memref<32x1xf32, #tpu.memory_space<vmem>>, %arg8: memref<2x32xf32, #tpu.memory_space<vmem>>, %arg9: memref<2x1xf32, #tpu.memory_space<vmem>>, %arg10: memref<32x2xf32, #tpu.memory_space<vmem>>, %arg11: memref<32x1xf32, #tpu.memory_space<vmem>>, %arg12: memref<4x64xbf16, #tpu.memory_space<vmem>>, %arg13: memref<64x4xbf16, #tpu.memory_space<vmem>>, %arg14: memref<1x64xf32, #tpu.memory_space<vmem>>, %arg15: memref<1x64xf32, #tpu.memory_space<vmem>>, %arg16: memref<32x64xf32, #tpu.memory_space<vmem>>) attributes {dimension_semantics = [#tpu.dimension_semantics<parallel>], iteration_bounds = array<i64: 1>, scalar_prefetch = 0 : i64, scratch_operands = 0 : i64, tpu.core_type = #tpu.core_type<tc>, window_params = [{transform_indices = @transform_0, window_bounds = array<i64: 32, 64>}, {pipeline_mode = #tpu.pipeline_mode<synchronous>, transform_indices = @transform_1, window_bounds = array<i64: 8, 32>}, {pipeline_mode = #tpu.pipeline_mode<synchronous>, transform_indices = @transform_2, window_bounds = array<i64: 8, 1>}, {pipeline_mode = #tpu.pipeline_mode<synchronous>, transform_indices = @transform_3, window_bounds = array<i64: 8, 24>}, {pipeline_mode = #tpu.pipeline_mode<synchronous>, transform_indices = @transform_4, window_bounds = array<i64: 8, 1>}, {pipeline_mode = #tpu.pipeline_mode<synchronous>, transform_indices = @transform_5, window_bounds = array<i64: 32, 8>}, {pipeline_mode = #tpu.pipeline_mode<synchronous>, transform_indices = @transform_6, window_bounds = array<i64: 32, 1>}, {pipeline_mode = #tpu.pipeline_mode<synchronous>, transform_indices = @transform_7, window_bounds = array<i64: 2, 32>}, {pipeline_mode = #tpu.pipeline_mode<synchronous>, transform_indices = @transform_8, window_bounds = array<i64: 2, 1>}, {pipeline_mode = #tpu.pipeline_mode<synchronous>, transform_indices = @transform_9, window_bounds = array<i64: 32, 2>}, {pipeline_mode = #tpu.pipeline_mode<synchronous>, transform_indices = @transform_10, window_bounds = array<i64: 32, 1>}, {pipeline_mode = #tpu.pipeline_mode<synchronous>, transform_indices = @transform_11, window_bounds = array<i64: 4, 64>}, {pipeline_mode = #tpu.pipeline_mode<synchronous>, transform_indices = @transform_12, window_bounds = array<i64: 64, 4>}, {pipeline_mode = #tpu.pipeline_mode<synchronous>, transform_indices = @transform_13, window_bounds = array<i64: 1, 64>}, {pipeline_mode = #tpu.pipeline_mode<synchronous>, transform_indices = @transform_14, window_bounds = array<i64: 1, 64>}, {transform_indices = @transform_15, window_bounds = array<i64: 32, 64>}]} {
    %c0 = arith.constant 0 : index
    %c0_0 = arith.constant 0 : index
    %0 = vector.load %arg1[%c0, %c0_0] : memref<32x64xbf16, #tpu.memory_space<vmem>>, vector<32x64xbf16>
    %c0_1 = arith.constant 0 : index
    %c0_2 = arith.constant 0 : index
    %1 = vector.load %arg2[%c0_1, %c0_2] : memref<8x32xbf16, #tpu.memory_space<vmem>>, vector<8x32xbf16>
    %cst = arith.constant dense<0.000000e+00> : vector<8x64xf32>
    %2 = tpu.matmul %1, %0, %cst {dimension_numbers = #tpu.dot_dimension_numbers<[1], [0], [0], [1], [0, 0, 1, 1], [], []>} : vector<8x32xbf16>, vector<32x64xbf16>, vector<8x64xf32> -> vector<8x64xf32>
    %c0_3 = arith.constant 0 : index
    %c0_4 = arith.constant 0 : index
    %3 = vector.load %arg3[%c0_3, %c0_4] : memref<8x1xf32, #tpu.memory_space<vmem>>, vector<8x1xf32>
    %4 = vector.broadcast %3 : vector<8x1xf32> to vector<8x64xf32>
    %5 = arith.addf %2, %4 : vector<8x64xf32>
    %cst_5 = arith.constant 0.000000e+00 : f32
    %6 = vector.broadcast %cst_5 : f32 to vector<8x64xf32>
    %7 = arith.maximumf %5, %6 : vector<8x64xf32>
    %c1_i32 = arith.constant 1 : i32
    %8 = tpu.dynamic_rotate %7 by %c1_i32 dim 1 : vector<8x64xf32>, i32 -> vector<8x64xf32>
    %c0_6 = arith.constant 0 : index
    %c0_7 = arith.constant 0 : index
    %9 = vector.load %arg14[%c0_6, %c0_7] : memref<1x64xf32, #tpu.memory_space<vmem>>, vector<1x64xf32>
    %10 = vector.broadcast %9 : vector<1x64xf32> to vector<8x64xf32>
    %11 = arith.mulf %8, %10 : vector<8x64xf32>
    %c63_i32 = arith.constant 63 : i32
    %12 = tpu.dynamic_rotate %7 by %c63_i32 dim 1 : vector<8x64xf32>, i32 -> vector<8x64xf32>
    %c0_8 = arith.constant 0 : index
    %c0_9 = arith.constant 0 : index
    %13 = vector.load %arg15[%c0_8, %c0_9] : memref<1x64xf32, #tpu.memory_space<vmem>>, vector<1x64xf32>
    %14 = vector.broadcast %13 : vector<1x64xf32> to vector<8x64xf32>
    %15 = arith.mulf %12, %14 : vector<8x64xf32>
    %16 = tpu.concatenate %11, %7, %15 in 0 : vector<8x64xf32>, vector<8x64xf32>, vector<8x64xf32> -> vector<24x64xf32>
    %17 = arith.truncf %16 : vector<24x64xf32> to vector<24x64xbf16>
    %c0_10 = arith.constant 0 : index
    %c0_11 = arith.constant 0 : index
    %18 = vector.load %arg4[%c0_10, %c0_11] : memref<8x24xbf16, #tpu.memory_space<vmem>>, vector<8x24xbf16>
    %cst_12 = arith.constant dense<0.000000e+00> : vector<8x64xf32>
    %19 = tpu.matmul %18, %17, %cst_12 {dimension_numbers = #tpu.dot_dimension_numbers<[1], [0], [0], [1], [0, 0, 1, 1], [], []>} : vector<8x24xbf16>, vector<24x64xbf16>, vector<8x64xf32> -> vector<8x64xf32>
    %c0_13 = arith.constant 0 : index
    %c0_14 = arith.constant 0 : index
    %20 = vector.load %arg5[%c0_13, %c0_14] : memref<8x1xf32, #tpu.memory_space<vmem>>, vector<8x1xf32>
    %21 = vector.broadcast %20 : vector<8x1xf32> to vector<8x64xf32>
    %22 = arith.addf %19, %21 : vector<8x64xf32>
    %cst_15 = arith.constant 0.000000e+00 : f32
    %23 = vector.broadcast %cst_15 : f32 to vector<8x64xf32>
    %24 = arith.maximumf %22, %23 : vector<8x64xf32>
    %c0_16 = arith.constant 0 : index
    %c0_17 = arith.constant 0 : index
    %25 = vector.load %arg6[%c0_16, %c0_17] : memref<32x8xbf16, #tpu.memory_space<vmem>>, vector<32x8xbf16>
    %26 = arith.truncf %24 : vector<8x64xf32> to vector<8x64xbf16>
    %cst_18 = arith.constant dense<0.000000e+00> : vector<32x64xf32>
    %27 = tpu.matmul %25, %26, %cst_18 {dimension_numbers = #tpu.dot_dimension_numbers<[1], [0], [0], [1], [0, 0, 1, 1], [], []>} : vector<32x8xbf16>, vector<8x64xbf16>, vector<32x64xf32> -> vector<32x64xf32>
    %c0_19 = arith.constant 0 : index
    %c0_20 = arith.constant 0 : index
    %28 = vector.load %arg7[%c0_19, %c0_20] : memref<32x1xf32, #tpu.memory_space<vmem>>, vector<32x1xf32>
    %29 = vector.broadcast %28 : vector<32x1xf32> to vector<32x64xf32>
    %30 = arith.addf %27, %29 : vector<32x64xf32>
    %31 = arith.truncf %30 : vector<32x64xf32> to vector<32x64xbf16>
    %c0_21 = arith.constant 0 : index
    %c0_22 = arith.constant 0 : index
    %32 = vector.load %arg13[%c0_21, %c0_22] : memref<64x4xbf16, #tpu.memory_space<vmem>>, vector<64x4xbf16>
    %cst_23 = arith.constant dense<0.000000e+00> : vector<32x4xf32>
    %33 = tpu.matmul %31, %32, %cst_23 {dimension_numbers = #tpu.dot_dimension_numbers<[1], [0], [0], [1], [0, 0, 1, 1], [], []>} : vector<32x64xbf16>, vector<64x4xbf16>, vector<32x4xf32> -> vector<32x4xf32>
    %c0_24 = arith.constant 0 : index
    %c0_25 = arith.constant 0 : index
    %34 = vector.load %arg8[%c0_24, %c0_25] : memref<2x32xf32, #tpu.memory_space<vmem>>, vector<2x32xf32>
    %cst_26 = arith.constant dense<0.000000e+00> : vector<2x4xf32>
    %35 = tpu.matmul %34, %33, %cst_26 {dimension_numbers = #tpu.dot_dimension_numbers<[1], [0], [0], [1], [0, 0, 1, 1], [], []>} : vector<2x32xf32>, vector<32x4xf32>, vector<2x4xf32> -> vector<2x4xf32>
    %c0_27 = arith.constant 0 : index
    %c0_28 = arith.constant 0 : index
    %36 = vector.load %arg9[%c0_27, %c0_28] : memref<2x1xf32, #tpu.memory_space<vmem>>, vector<2x1xf32>
    %37 = vector.broadcast %36 : vector<2x1xf32> to vector<2x4xf32>
    %38 = arith.addf %35, %37 : vector<2x4xf32>
    %cst_29 = arith.constant 0.000000e+00 : f32
    %39 = vector.broadcast %cst_29 : f32 to vector<2x4xf32>
    %40 = arith.maximumf %38, %39 : vector<2x4xf32>
    %c0_30 = arith.constant 0 : index
    %c0_31 = arith.constant 0 : index
    %41 = vector.load %arg10[%c0_30, %c0_31] : memref<32x2xf32, #tpu.memory_space<vmem>>, vector<32x2xf32>
    %cst_32 = arith.constant dense<0.000000e+00> : vector<32x4xf32>
    %42 = tpu.matmul %41, %40, %cst_32 {dimension_numbers = #tpu.dot_dimension_numbers<[1], [0], [0], [1], [0, 0, 1, 1], [], []>} : vector<32x2xf32>, vector<2x4xf32>, vector<32x4xf32> -> vector<32x4xf32>
    %c0_33 = arith.constant 0 : index
    %c0_34 = arith.constant 0 : index
    %43 = vector.load %arg11[%c0_33, %c0_34] : memref<32x1xf32, #tpu.memory_space<vmem>>, vector<32x1xf32>
    %44 = vector.broadcast %43 : vector<32x1xf32> to vector<32x4xf32>
    %45 = arith.addf %42, %44 : vector<32x4xf32>
    %46 = arith.negf %45 : vector<32x4xf32>
    %47 = math.exp %46 : vector<32x4xf32>
    %cst_35 = arith.constant 1.000000e+00 : f32
    %48 = vector.broadcast %cst_35 : f32 to vector<32x4xf32>
    %49 = arith.addf %48, %47 : vector<32x4xf32>
    %50 = arith.divf %48, %49 : vector<32x4xf32>
    %51 = arith.truncf %50 : vector<32x4xf32> to vector<32x4xbf16>
    %c0_36 = arith.constant 0 : index
    %c0_37 = arith.constant 0 : index
    %52 = vector.load %arg12[%c0_36, %c0_37] : memref<4x64xbf16, #tpu.memory_space<vmem>>, vector<4x64xbf16>
    %cst_38 = arith.constant dense<0.000000e+00> : vector<32x64xf32>
    %53 = tpu.matmul %51, %52, %cst_38 {dimension_numbers = #tpu.dot_dimension_numbers<[1], [0], [0], [1], [0, 0, 1, 1], [], []>} : vector<32x4xbf16>, vector<4x64xbf16>, vector<32x64xf32> -> vector<32x64xf32>
    %54 = arith.mulf %53, %30 : vector<32x64xf32>
    %55 = arith.extf %0 : vector<32x64xbf16> to vector<32x64xf32>
    %56 = arith.addf %54, %55 : vector<32x64xf32>
    %cst_39 = arith.constant 0.000000e+00 : f32
    %57 = vector.broadcast %cst_39 : f32 to vector<32x64xf32>
    %58 = arith.maximumf %56, %57 : vector<32x64xf32>
    %c0_40 = arith.constant 0 : index
    %c0_41 = arith.constant 0 : index
    %59 = vector.load %arg16[%c0_40, %c0_41] : memref<32x64xf32, #tpu.memory_space<vmem>>, vector<32x64xf32>
    tpu.vector_store %arg16[%c0_40, %c0_41], %58 {strides = array<i32>} : memref<32x64xf32, #tpu.memory_space<vmem>>, vector<32x64xf32>,
    return
  }
  func.func @transform_0(%arg0: i32) -> (i32, i32) {
    %c0_i32 = arith.constant 0 : i32
    %c0_i32_0 = arith.constant 0 : i32
    return %c0_i32, %arg0 : i32, i32
  }
  func.func @transform_1(%arg0: i32) -> (i32, i32) {
    %c0_i32 = arith.constant 0 : i32
    %c0_i32_0 = arith.constant 0 : i32
    %c0_i32_1 = arith.constant 0 : i32
    return %c0_i32, %c0_i32_0 : i32, i32
  }
  func.func @transform_2(%arg0: i32) -> (i32, i32) {
    %c0_i32 = arith.constant 0 : i32
    %c0_i32_0 = arith.constant 0 : i32
    %c0_i32_1 = arith.constant 0 : i32
    return %c0_i32, %c0_i32_0 : i32, i32
  }
  func.func @transform_3(%arg0: i32) -> (i32, i32) {
    %c0_i32 = arith.constant 0 : i32
    %c0_i32_0 = arith.constant 0 : i32
    %c0_i32_1 = arith.constant 0 : i32
    return %c0_i32, %c0_i32_0 : i32, i32
  }
  func.func @transform_4(%arg0: i32) -> (i32, i32) {
    %c0_i32 = arith.constant 0 : i32
    %c0_i32_0 = arith.constant 0 : i32
    %c0_i32_1 = arith.constant 0 : i32
    return %c0_i32, %c0_i32_0 : i32, i32
  }
  func.func @transform_5(%arg0: i32) -> (i32, i32) {
    %c0_i32 = arith.constant 0 : i32
    %c0_i32_0 = arith.constant 0 : i32
    %c0_i32_1 = arith.constant 0 : i32
    return %c0_i32, %c0_i32_0 : i32, i32
  }
  func.func @transform_6(%arg0: i32) -> (i32, i32) {
    %c0_i32 = arith.constant 0 : i32
    %c0_i32_0 = arith.constant 0 : i32
    %c0_i32_1 = arith.constant 0 : i32
    return %c0_i32, %c0_i32_0 : i32, i32
  }
  func.func @transform_7(%arg0: i32) -> (i32, i32) {
    %c0_i32 = arith.constant 0 : i32
    %c0_i32_0 = arith.constant 0 : i32
    %c0_i32_1 = arith.constant 0 : i32
    return %c0_i32, %c0_i32_0 : i32, i32
  }
  func.func @transform_8(%arg0: i32) -> (i32, i32) {
    %c0_i32 = arith.constant 0 : i32
    %c0_i32_0 = arith.constant 0 : i32
    %c0_i32_1 = arith.constant 0 : i32
    return %c0_i32, %c0_i32_0 : i32, i32
  }
  func.func @transform_9(%arg0: i32) -> (i32, i32) {
    %c0_i32 = arith.constant 0 : i32
    %c0_i32_0 = arith.constant 0 : i32
    %c0_i32_1 = arith.constant 0 : i32
    return %c0_i32, %c0_i32_0 : i32, i32
  }
  func.func @transform_10(%arg0: i32) -> (i32, i32) {
    %c0_i32 = arith.constant 0 : i32
    %c0_i32_0 = arith.constant 0 : i32
    %c0_i32_1 = arith.constant 0 : i32
    return %c0_i32, %c0_i32_0 : i32, i32
  }
  func.func @transform_11(%arg0: i32) -> (i32, i32) {
    %c0_i32 = arith.constant 0 : i32
    %c0_i32_0 = arith.constant 0 : i32
    %c0_i32_1 = arith.constant 0 : i32
    return %c0_i32, %c0_i32_0 : i32, i32
  }
  func.func @transform_12(%arg0: i32) -> (i32, i32) {
    %c0_i32 = arith.constant 0 : i32
    %c0_i32_0 = arith.constant 0 : i32
    %c0_i32_1 = arith.constant 0 : i32
    return %c0_i32, %c0_i32_0 : i32, i32
  }
  func.func @transform_13(%arg0: i32) -> (i32, i32) {
    %c0_i32 = arith.constant 0 : i32
    %c0_i32_0 = arith.constant 0 : i32
    %c0_i32_1 = arith.constant 0 : i32
    return %c0_i32, %c0_i32_0 : i32, i32
  }
  func.func @transform_14(%arg0: i32) -> (i32, i32) {
    %c0_i32 = arith.constant 0 : i32
    %c0_i32_0 = arith.constant 0 : i32
    %c0_i32_1 = arith.constant 0 : i32
    return %c0_i32, %c0_i32_0 : i32, i32
  }
  func.func @transform_15(%arg0: i32) -> (i32, i32) {
    %c0_i32 = arith.constant 0 : i32
    %c0_i32_0 = arith.constant 0 : i32
    return %c0_i32, %arg0 : i32, i32
  }
}

</mosaic_0001>

<bundles_post_ra>
// kernel: tpu_custom_call.1
= control target key start
LH: loop header
LB: loop body
LE: loop exit
PB: predicated region body
PF: predicated region fallthrough
CT: control target
= control target key end

     0   :  { %v654_v1 = vmov 0   ;;  %s873_s0 = inlined_call_operand.vmem [shape: bf16[32,64], index: 0, kind: input, shape index: {}]   ;;  %s874_s1 = inlined_call_operand.vmem [shape: bf16[8,32], index: 1, kind: input, shape index: {}]   ;;  %s875_s2 = inlined_call_operand.vmem [shape: f32[8,1], index: 2, kind: input, shape index: {}]   ;;  %s876_s3 = inlined_call_operand.vmem [shape: bf16[8,24], index: 3, kind: input, shape index: {}]   ;;  %s877_s4 = inlined_call_operand.vmem [shape: f32[8,1], index: 4, kind: input, shape index: {}]   ;;  %s878_s5 = inlined_call_operand.vmem [shape: bf16[32,8], index: 5, kind: input, shape index: {}]   ;;  %s879_s6 = inlined_call_operand.vmem [shape: f32[32,1], index: 6, kind: input, shape index: {}]   ;;  %s880_s7 = inlined_call_operand.vmem [shape: f32[2,32], index: 7, kind: input, shape index: {}]   ;;  %s881_s8 = inlined_call_operand.vmem [shape: f32[2,1], index: 8, kind: input, shape index: {}]   ;;  %s882_s9 = inlined_call_operand.vmem [shape: f32[32,2], index: 9, kind: input, shape index: {}]   ;;  %s883_s10 = inlined_call_operand.vmem [shape: f32[32,1], index: 10, kind: input, shape index: {}]   ;;  %s884_s11 = inlined_call_operand.vmem [shape: bf16[4,64], index: 11, kind: input, shape index: {}]   ;;  %s885_s12 = inlined_call_operand.vmem [shape: bf16[64,4], index: 12, kind: input, shape index: {}]   ;;  %s886_s13 = inlined_call_operand.vmem [shape: f32[1,64], index: 13, kind: input, shape index: {}]   ;;  %s887_s14 = inlined_call_operand.vmem [shape: f32[1,64], index: 14, kind: input, shape index: {}]   ;;  %s888_s15 = inlined_call_operand.hbm [shape: f32[32,64], index: 15, kind: output, shape index: {}]  }
   0x1   :  { %v590_v0 = vld [vmem:[%s873_s0 + $0x8] sm:$0xff]  ;;  %607 = vset.pattern.permute.xlu0 %v654_v1  ;;  %v57_v2 = vld [vmem:[%s875_s2] sm:$0xff]  ;;  %608 = vset.pattern.permute.xlu1 %v654_v1 }
   0x2   :  { %85 = vmatpush.bf16.msra.mxu0 %v590_v0  ;;  %v589_v3 = vld [vmem:[%s873_s0] sm:$0xff]  ;;  %60 = vperm.xlu0 %607, %v57_v2  }
   0x3   :  { %20 = vsyncpa [#allocation3], 0  ;;  %609 = vset.pattern.permute.xlu2 %v654_v1  ;;  %v56_v4 = vld [vmem:[%s874_s1] sm:$0xf]  ;;  %vm75_vm0 = vcmask 261120   ;;  %s655_s2 = smov 64  }
   0x4   :  { %s656_s26 = smov 63   ;;  %v125_v10 = vld [vmem:[%s877_s4] sm:$0xff]  ;;  %v167_v11 = vld [vmem:[%s879_s6 + $0x10] sm:$0xff]  ;;  %v324_v13 = vld [vmem:[%s883_s10 + $0x8] sm:$0xff]  ;;  %vm93_vm1 = vcmask 1048064   ;;  %s657_s20 = smov 1  }
   0x5   :  { %v325_v12 = vld [vmem:[%s883_s10 + $0x10] sm:$0xff]  ;;  %v610_v16 = vld [vmem:[%s887_s14] ss:$0 sm:$0xff]  ;;  %s658_s21 = smov 62   ;;  %s659_s24 = smov 65   ;;  %vm142_vm2 = vcmask 1043456  }
   0x6   :  { %86 = vmatpush.bf16.msra.mxu0 %v589_v3  ;;  %v611_v21 = vld [vmem:[%s886_s13] ss:$0 sm:$0xff]  ;;  %vm138_vm3 = vcmask 195584   ;;  %v168_v33 = vld [vmem:[%s879_s6 + $0x18] sm:$0xff]  ;;  %v166_v34 = vld [vmem:[%s879_s6 + $0x8] sm:$0xff]  ;;  %vm199_vm4 = vcmask 64512  }
   0x7   :  { %v124_v31 = vld [vmem:[%s876_s3] sm:$0xf]  ;;  %v326_v38 = vld [vmem:[%s883_s10 + $0x18] sm:$0xff]  ;;  %v592_v46 = vld [vmem:[%s878_s5 + $0x8] sm:$0xff]  ;;  %vm262_vm5 = vcmask 523264   ;;  %vm360_vm6 = vcmask 1041408  }
   0x8   :  { %v165_v32 = vld [vmem:[%s879_s6] sm:$0xff]  ;;  %v596_v47 = vld [vmem:[%s885_s12 + $0x18] sm:$0xff]  ;;  %v595_v48 = vld [vmem:[%s885_s12 + $0x10] sm:$0xff]  ;;  %vm347_vm7 = vcmask 15360   ;;  %s660_s17 = smov [#allocation2]   ;;  %s527_s19 = sshll.u32 %s888_s15, 4  ;;  %s528_s19 = int_to_ptr.hbm [resolvable:$true] %s527_s19 }
   0x9   :  { %547 = vmatmul.msk.bf16.vlgmr.msra.gmra.mxu0 %vm75_vm0, %v56_v4  ;;  %v289_v39 = vld [vmem:[%s881_s8] sm:$0x3]  ;;  %273 = vmatpush.bf16.msra.mxu3 %v596_v47  ;;  %v594_v49 = vld [vmem:[%s885_s12 + $0x8] sm:$0xff]  ;;  %s525_s18 = sshll.u32 %s660_s17, 4  ;;  %s526_s18 = int_to_ptr.vmem [resolvable:$true] %s525_s18 }
   0xa   :  { %v591_v43 = vld [vmem:[%s878_s5] sm:$0xff] }
   0xb   :  { %v323_v45 = vld [vmem:[%s883_s10] sm:$0xff] }
   0xc   :  { %v593_v50 = vld [vmem:[%s885_s12] sm:$0xff] }
   0xd   :  { %274 = vmatpush.bf16.msra.mxu3 %v595_v48 }
  0x11   :  { %275 = vmatpush.bf16.msra.mxu3 %v594_v49 }
  0x15   :  { %276 = vmatpush.bf16.msra.mxu3 %v593_v50 }
  0x74   :  { %v61_v5 = vpop.permute.xlu0 %60 }
  0x86   :  { %v88_v6 = vpop.f32.mrf.mxu0 }
  0x87   :  { %v89_v7 = vadd.f32 %v88_v6, %v61_v5  ;;  %v288_v5 = vld [vmem:[%s880_s7] sm:$0x3] }
  0x88   :  { %v471_v6 = vld [vmem:[%s884_s11] sm:$0x3] }
  0x89   :  { %v92_v8 = vmax.f32 %v89_v7, 0.0  ;;  %v480_v7 = vsel %vm360_vm6, %v471_v6, 0 }
  0x8b   :  { %94 = vrot.lane.b32.xlu0 %v92_v8, %s655_s2 }
  0x8e   :  { %v90_v9 = vpop.f32.mrf.mxu0 }
  0x93   :  { %115 = vrot.lane.b32.xlu0 %v92_v8, %s656_s26 }
  0x9b   :  { %128 = vperm.xlu0 %607, %v125_v10  }
  0xa3   :  { %181 = vperm.xlu0 %607, %v167_v11  }
  0xab   :  { %339 = vperm.xlu0 %607, %v325_v12   ;;  %v319_v12 = vld [vmem:[%s882_s9] sm:$0xff] }
  0xb3   :  { %334 = vperm.xlu0 %607, %v324_v13   ;;  %v320_v13 = vld [vmem:[%s882_s9 + $0x8] sm:$0xff] }
  0xfd   :  { %v95_v14 = vpop.permute.xlu0 %94 }
  0xfe   :  { %v96_v15 = vsel %vm93_vm1, %v95_v14, %v92_v8  ;;  %v321_v14 = vld [vmem:[%s882_s9 + $0x10] sm:$0xff] }
  0xff   :  { %97 = vrot.lane.b32.xlu1 %v96_v15, %s655_s2  ;;  %v322_v15 = vld [vmem:[%s882_s9 + $0x18] sm:$0xff] }
 0x105   :  { %v116_v26 = vpop.permute.xlu0 %115 }
 0x107   :  { %110 = vrot.lane.b32.xlu1 %v610_v16, %s657_s20  ;;  %s662_s20 = smov 8  }
 0x10d   :  { %v129_v35 = vpop.permute.xlu0 %128 }
 0x115   :  { %v182_v59 = vpop.permute.xlu0 %181 }
 0x11d   :  { %v340_v16 = vpop.permute.xlu0 %339 }
 0x171   :  { %v98_v17 = vpop.permute.xlu1 %97 }
 0x172   :  { %v99_v18 = vsel %vm93_vm1, %v98_v17, %v92_v8 }
 0x179   :  { %v111_v19 = vpop.permute.xlu1 %110 }
 0x17a   :  { %v113_v20 = vmul.f32 %v111_v19, %v99_v18 }
 0x17c   :  { %119 = vrot.lane.b32.xlu2 %v113_v20, %s658_s21 }
 0x184   :  { %103 = vrot.lane.b32.xlu2 %v611_v21, %s656_s26  ;;  %v335_v21 = vpop.permute.xlu0 %334 }
 0x1d6   :  { %v120_v22 = vpop.permute.xlu2 %119 }
 0x1d7   :  { %v123_v23 = vpack.c.bf16 %v120_v22, %v120_v22 }
 0x1d9   :  { %135 = vrot.lane.b32.xlu1 %v123_v23, %s659_s24 }
 0x1de   :  { %v104_v24 = vpop.permute.xlu2 %103 }
 0x1df   :  { %v106_v25 = vmul.f32 %v104_v24, %v99_v18 }
 0x1e1   :  { %v122_v27 = vpack.c.bf16 %v116_v26, %v106_v25  ;;  %171 = vperm.xlu1 %608, %v165_v32  }
 0x1e3   :  { %133 = vrot.lane.b32.xlu2 %v122_v27, %s659_s24 }
 0x1e9   :  { %186 = vperm.xlu1 %608, %v168_v33  }
 0x1eb   :  { %176 = vperm.xlu2 %609, %v166_v34  }
 0x1f1   :  { %344 = vperm.xlu1 %608, %v326_v38  }
 0x1f3   :  { %292 = vperm.xlu2 %609, %v289_v39  }
 0x1fb   :  { %329 = vperm.xlu2 %609, %v323_v45  }
 0x23d   :  { %v134_v30 = vpop.permute.xlu2 %133 }
 0x245   :  { %v177_v52 = vpop.permute.xlu2 %176 }
 0x24b   :  { %v136_v28 = vpop.permute.xlu1 %135 }
 0x24c   :  { %v144_v29 = vsel %vm142_vm2, %v136_v28, 0 }
 0x24d   :  { %152 = vmatpush.bf16.msra.mxu1 %v144_v29  ;;  %v293_v8 = vpop.permute.xlu2 %292 }
 0x251   :  { %153 = vmatpush.bf16.msra.mxu1 %v134_v30 }
 0x253   :  { %v172_v53 = vpop.permute.xlu1 %171 }
 0x254   :  { %548 = vmatmul.msk.bf16.vlgmr.msra.gmra.mxu1 %vm138_vm3, %v124_v31 }
 0x255   :  { %v330_v17 = vpop.permute.xlu2 %329 }
 0x25b   :  { %v187_v60 = vpop.permute.xlu1 %186 }
 0x2d1   :  { %v155_v36 = vpop.f32.mrf.mxu1 }
 0x2d2   :  { %v156_v37 = vadd.f32 %v155_v36, %v129_v35  ;;  %v345_v35 = vpop.permute.xlu1 %344 }
 0x2d4   :  { %v159_v40 = vmax.f32 %v156_v37, 0.0 }
 0x2d6   :  { %v164_v41 = vpack.c.bf16 %v159_v40, %v159_v40 }
 0x2d8   :  { %v207_v42 = vsel %vm142_vm2, %v164_v41, 0 }
 0x2d9   :  { %v157_v44 = vpop.f32.mrf.mxu1  ;;  %216 = vmatpush.bf16.msra.mxu2 %v207_v42 }
 0x2dc   :  { %557 = vmatmul.msk.bf16.vlgmr.msra.gmra.mxu2 %vm199_vm4, %v591_v43 }
 0x2dd   :  { %597 = vmatpush.bf16.msrb.mxu2 %v480_v7 }
 0x2ec   :  { %558 = vmatmul.msk.bf16.gmra.mxu2 %vm199_vm4, %v592_v46 }
 0x35f   :  { %v218_v51 = vpop.f32.mrf.mxu2 }
 0x360   :  { %v815_v55 = vadd.f32 %v218_v51, %v172_v53 }
 0x367   :  { %v220_v54 = vpop.f32.mrf.mxu2 }
 0x368   :  { %v817_v56 = vadd.f32 %v220_v54, %v177_v52 }
 0x36a   :  { %v228_v57 = vpack.c.bf16 %v817_v56, %v815_v55 }
 0x36c   :  { %575 = vmatmul.msk.bf16.vlgmr.msra.gmra.mxu3 %vm262_vm5, %v228_v57 }
 0x36f   :  { %v223_v58 = vpop.f32.mrf.mxu2 }
 0x370   :  { %v822_v62 = vadd.f32 %v223_v58, %v182_v59 }
 0x377   :  { %v225_v61 = vpop.f32.mrf.mxu2 }
 0x378   :  { %v824_v63 = vadd.f32 %v225_v61, %v187_v60 }
 0x37a   :  { %v229_v0 = vpack.c.bf16 %v824_v63, %v822_v62 }
 0x37c   :  { %576 = vmatmul.msk.bf16.gmra.mxu3 %vm262_vm5, %v229_v0 }
 0x3ef   :  { %v278_v1 = vpop.f32.mrf.mxu3 }
 0x3f7   :  { %v280_v2 = vpop.f32.mrf.mxu3 }
 0x3ff   :  { %v283_v3 = vpop.f32.mrf.mxu3 }
 0x407   :  { %v285_v4 = vpop.f32.mrf.mxu3 }
 0x408   :  { %310 = vmatpush.msrb.mxu0 %v285_v4 }
 0x40a   :  { %311 = vmatpush.msrb.mxu0 %v283_v3 }
 0x40c   :  { %312 = vmatpush.msrb.mxu0 %v280_v2 }
 0x40e   :  { %313 = vmatpush.msrb.mxu0 %v278_v1 }
 0x40f   :  { %577 = vmatmul.msk.f32.vlgmr.msrb.gmra.mxu0 %vm75_vm0, %v288_v5  ;;  %vm472_vm0 = vcmask 31744  }
 0x410   :  { %489 = vmatpush.bf16.msra.mxu0 %v480_v7 }
 0x48c   :  { %v315_v9 = vpop.f32.mrf.mxu0 }
 0x48d   :  { %v316_v10 = vadd.f32 %v315_v9, %v293_v8 }
 0x48f   :  { %v318_v11 = vmax.f32 %v316_v10, 0.0 }
 0x491   :  { %578 = vmatpush.msk.msrb.mxu1 %vm360_vm6, %v318_v11 }
 0x492   :  { %579 = vmatmul.msk.f32.vlgmr.msrb.gmra.mxu1 %vm347_vm7, %v319_v12 }
 0x49a   :  { %580 = vmatmul.msk.f32.gmra.mxu1 %vm347_vm7, %v320_v13 }
 0x4a2   :  { %581 = vmatmul.msk.f32.gmra.mxu1 %vm347_vm7, %v321_v14 }
 0x4aa   :  { %582 = vmatmul.msk.f32.gmra.mxu1 %vm347_vm7, %v322_v15 }
 0x50f   :  { %v381_v18 = vpop.f32.mrf.mxu1 }
 0x510   :  { %v382_v19 = vadd.f32 %v381_v18, %v330_v17 }
 0x512   :  { %v583_v20 = vmul.f32 -1.442695, %v382_v19 }
 0x514   :  { %612 = vpow2.f32 %v583_v20 }
 0x517   :  { %v384_v22 = vpop.f32.mrf.mxu1 }
 0x518   :  { %v385_v23 = vadd.f32 %v384_v22, %v335_v21 }
 0x51a   :  { %v613_v24 = vpop.eup %612  ;;  %v584_v25 = vmul.f32 -1.442695, %v385_v23  ;;  %v52_v23 = vld [vmem:[%s873_s0] sm:$0xff]  }
 0x51b   :  { %v405_v26 = vadd.f32 1.0, %v613_v24  ;;  %v505_v24 = vunpack.c.l.bf16 %v52_v23 }
 0x51c   :  { %614 = vpow2.f32 %v584_v25 }
 0x51d   :  { %616 = vrcp.f32 %v405_v26  ;;  %vm414_vm9 = vweird.f32 %v405_v26  ;;  %v420_v46 = vand.u32 2147483648, %v405_v26  ;;  %v418_v49 = vand.u32 2147483647, %v405_v26 }
 0x51f   :  { %v387_v27 = vpop.f32.mrf.mxu1  ;;  %v421_v58 = vor.u32 1.1754944e-38, %v420_v46  ;;  %vm419_vm14 = vcmp.eq.f32.partialorder %v418_v49, 8.507059e+37 }
 0x520   :  { %v388_v28 = vadd.f32 %v387_v27, %v340_v16 }
 0x522   :  { %v615_v29 = vpop.eup %614  ;;  %v585_v30 = vmul.f32 -1.442695, %v388_v28 }
 0x523   :  { %v617_v31 = vpop.eup %616  ;;  %v406_v32 = vadd.f32 1.0, %v615_v29  ;;  %v506_v29 = vunpack.c.h.bf16 %v52_v23 }
 0x524   :  { %v410_v33 = vmul.f32 %v617_v31, %v405_v26  ;;  %618 = vpow2.f32 %v585_v30  ;;  %vm415_vm8 = vweird.f32 %v617_v31 }
 0x525   :  { %620 = vrcp.f32 %v406_v32  ;;  %v435_v47 = vand.u32 2147483648, %v406_v32  ;;  %v433_v50 = vand.u32 2147483647, %v406_v32  ;;  %vm848_vm11 = vmor %vm414_vm9, %vm415_vm8  ;;  %vm429_vm12 = vweird.f32 %v406_v32 }
 0x526   :  { %v411_v34 = vsub.f32 1.0, %v410_v33 }
 0x527   :  { %v390_v36 = vpop.f32.mrf.mxu1  ;;  %v436_v59 = vor.u32 1.1754944e-38, %v435_v47  ;;  %vm434_vm15 = vcmp.eq.f32.partialorder %v433_v50, 8.507059e+37 }
 0x528   :  { %v391_v37 = vadd.f32 %v390_v36, %v345_v35  ;;  %v412_v39 = vmul.f32 %v617_v31, %v411_v34  ;;  %v54_v34 = vld [vmem:[%s873_s0 + $0x8] sm:$0xff]   ;;  %s661_s0 = smov 128  }
 0x529   :  { %v507_v35 = vunpack.c.l.bf16 %v54_v34 }
 0x52a   :  { %v619_v38 = vpop.eup %618  ;;  %v586_v40 = vmul.f32 -1.442695, %v391_v37  ;;  %v413_v45 = vadd.f32 %v617_v31, %v412_v39  ;;  %v508_v39 = vunpack.c.h.bf16 %v54_v34 }
 0x52b   :  { %v621_v41 = vpop.eup %620  ;;  %v407_v42 = vadd.f32 1.0, %v619_v38 }
 0x52c   :  { %v425_v43 = vmul.f32 %v621_v41, %v406_v32  ;;  %622 = vpow2.f32 %v586_v40  ;;  %vm430_vm10 = vweird.f32 %v621_v41  ;;  %v417_v53 = vsel %vm848_vm11, %v617_v31, %v413_v45 }
 0x52d   :  { %624 = vrcp.f32 %v407_v42  ;;  %vm431_vm13 = vmor %vm429_vm12, %vm430_vm10  ;;  %v422_v1 = vsel %vm419_vm14, %v421_v58, %v417_v53  ;;  %vm444_vm2 = vweird.f32 %v407_v42  ;;  %v450_v10 = vand.u32 2147483648, %v407_v42 }
 0x52e   :  { %v426_v44 = vsub.f32 1.0, %v425_v43  ;;  %v448_v12 = vand.u32 2147483647, %v407_v42 }
 0x52f   :  { %v451_v17 = vor.u32 1.1754944e-38, %v450_v10 }
 0x530   :  { %v427_v48 = vmul.f32 %v621_v41, %v426_v44  ;;  %vm449_vm8 = vcmp.eq.f32.partialorder %v448_v12, 8.507059e+37 }
 0x532   :  { %v623_v52 = vpop.eup %622  ;;  %v428_v54 = vadd.f32 %v621_v41, %v427_v48 }
 0x533   :  { %v625_v57 = vpop.eup %624  ;;  %v408_v60 = vadd.f32 1.0, %v623_v52 }
 0x534   :  { %v440_v61 = vmul.f32 %v625_v57, %v407_v42  ;;  %v432_v0 = vsel %vm431_vm13, %v621_v41, %v428_v54  ;;  %vm445_vm1 = vweird.f32 %v625_v57 }
 0x535   :  { %626 = vrcp.f32 %v408_v60  ;;  %v437_v2 = vsel %vm434_vm15, %v436_v59, %v432_v0  ;;  %v465_v11 = vand.u32 2147483648, %v408_v60  ;;  %v463_v14 = vand.u32 2147483647, %v408_v60  ;;  %vm446_vm4 = vmor %vm444_vm2, %vm445_vm1 }
 0x536   :  { %v441_v3 = vsub.f32 1.0, %v440_v61  ;;  %v469_v4 = vpack.c.bf16 %v437_v2, %v422_v1  ;;  %vm459_vm6 = vweird.f32 %v408_v60 }
 0x537   :  { %v466_v18 = vor.u32 1.1754944e-38, %v465_v11  ;;  %vm464_vm9 = vcmp.eq.f32.partialorder %v463_v14, 8.507059e+37 }
 0x538   :  { %587 = vmatmul.msk.bf16.vlgmr.msra.gmra.mxu0 %vm472_vm0, %v469_v4  ;;  %v442_v5 = vmul.f32 %v625_v57, %v441_v3 }
 0x53a   :  { %v443_v9 = vadd.f32 %v625_v57, %v442_v5 }
 0x53b   :  { %v627_v6 = vpop.eup %626 }
 0x53c   :  { %v455_v7 = vmul.f32 %v627_v6, %v408_v60  ;;  %vm460_vm3 = vweird.f32 %v627_v6  ;;  %v447_v15 = vsel %vm446_vm4, %v625_v57, %v443_v9 }
 0x53d   :  { %vm461_vm7 = vmor %vm459_vm6, %vm460_vm3  ;;  %v452_v20 = vsel %vm449_vm8, %v451_v17, %v447_v15 }
 0x53e   :  { %v456_v8 = vsub.f32 1.0, %v455_v7 }
 0x540   :  { %v457_v13 = vmul.f32 %v627_v6, %v456_v8 }
 0x542   :  { %v458_v16 = vadd.f32 %v627_v6, %v457_v13 }
 0x544   :  { %v462_v19 = vsel %vm461_vm7, %v627_v6, %v458_v16 }
 0x545   :  { %v467_v21 = vsel %vm464_vm9, %v466_v18, %v462_v19 }
 0x546   :  { %v470_v22 = vpack.c.bf16 %v467_v21, %v452_v20 }
 0x548   :  { %588 = vmatmul.msk.bf16.vlgmr.msrb.gmra.mxu2 %vm472_vm0, %v470_v22 }
 0x5b5   :  { %v491_v25 = vpop.f32.mrf.mxu0 }
 0x5b6   :  { %v501_v26 = vmul.f32 %v491_v25, %v815_v55 }
 0x5b8   :  { %v509_v27 = vadd.f32 %v505_v24, %v501_v26 }
 0x5ba   :  { %v513_v28 = vmax.f32 %v509_v27, 0.0 }
 0x5bc   :  { %517 = vst.msk [vmem:[#allocation2] sm:$0xff] %vm262_vm5, %v513_v28 }
 0x5bd   :  { %v493_v30 = vpop.f32.mrf.mxu0 }
 0x5be   :  { %v502_v31 = vmul.f32 %v493_v30, %v817_v56 }
 0x5c0   :  { %v510_v32 = vadd.f32 %v506_v29, %v502_v31 }
 0x5c2   :  { %v514_v33 = vmax.f32 %v510_v32, 0.0 }
 0x5c4   :  { %518 = vst.msk [vmem:[#allocation2 + $0x8] sm:$0xff] %vm262_vm5, %v514_v33 }
 0x5cb   :  { %v496_v36 = vpop.f32.mrf.mxu2 }
 0x5cc   :  { %v503_v55 = vmul.f32 %v496_v36, %v822_v62 }
 0x5ce   :  { %v511_v37 = vadd.f32 %v507_v35, %v503_v55 }
 0x5d0   :  { %v515_v38 = vmax.f32 %v511_v37, 0.0 }
 0x5d2   :  { %519 = vst.msk [vmem:[#allocation2 + $0x10] sm:$0xff] %vm262_vm5, %v515_v38 }
 0x5d3   :  { %v498_v40 = vpop.f32.mrf.mxu2 }
 0x5d4   :  { %v504_v56 = vmul.f32 %v498_v40, %v824_v63 }
 0x5d6   :  { %v512_v41 = vadd.f32 %v508_v39, %v504_v56 }
 0x5d8   :  { %v516_v42 = vmax.f32 %v512_v41, 0.0 }
 0x5da   :  { %520 = vst.msk [vmem:[#allocation2 + $0x18] sm:$0xff] %vm262_vm5, %v516_v42 }
 0x5db   :  { %533 = dma.vmem_to_hbm [thread:$0]  %s526_s18, 512, %s528_s19, [#allocation3], %s661_s0, %s661_s0, %s662_s20  }
 0x5dc   :  { %652 = dma.done.wait [#allocation3], 512  }
 0x5dd   :  { %653 = vsyncadd [#allocation3], 4294966784 }
 0x5de   :  { %538 = vsyncpa [#allocation3], 1 }

// kernel: tpu_custom_call.1
= control target key start
LH: loop header
LB: loop body
LE: loop exit
PB: predicated region body
PF: predicated region fallthrough
CT: control target
= control target key end

     0   :  { %v654_v1 = vmov 0   ;;  %s873_s0 = inlined_call_operand.vmem [shape: bf16[32,64], index: 0, kind: input, shape index: {}]   ;;  %s874_s1 = inlined_call_operand.vmem [shape: bf16[8,32], index: 1, kind: input, shape index: {}]   ;;  %s875_s2 = inlined_call_operand.vmem [shape: f32[8,1], index: 2, kind: input, shape index: {}]   ;;  %s876_s3 = inlined_call_operand.vmem [shape: bf16[8,24], index: 3, kind: input, shape index: {}]   ;;  %s877_s4 = inlined_call_operand.vmem [shape: f32[8,1], index: 4, kind: input, shape index: {}]   ;;  %s878_s5 = inlined_call_operand.vmem [shape: bf16[32,8], index: 5, kind: input, shape index: {}]   ;;  %s879_s6 = inlined_call_operand.vmem [shape: f32[32,1], index: 6, kind: input, shape index: {}]   ;;  %s880_s7 = inlined_call_operand.vmem [shape: f32[2,32], index: 7, kind: input, shape index: {}]   ;;  %s881_s8 = inlined_call_operand.vmem [shape: f32[2,1], index: 8, kind: input, shape index: {}]   ;;  %s882_s9 = inlined_call_operand.vmem [shape: f32[32,2], index: 9, kind: input, shape index: {}]   ;;  %s883_s10 = inlined_call_operand.vmem [shape: f32[32,1], index: 10, kind: input, shape index: {}]   ;;  %s884_s11 = inlined_call_operand.vmem [shape: bf16[4,64], index: 11, kind: input, shape index: {}]   ;;  %s885_s12 = inlined_call_operand.vmem [shape: bf16[64,4], index: 12, kind: input, shape index: {}]   ;;  %s886_s13 = inlined_call_operand.vmem [shape: f32[1,64], index: 13, kind: input, shape index: {}]   ;;  %s887_s14 = inlined_call_operand.vmem [shape: f32[1,64], index: 14, kind: input, shape index: {}]   ;;  %s888_s15 = inlined_call_operand.hbm [shape: f32[32,64], index: 15, kind: output, shape index: {}]  }
   0x1   :  { %v590_v0 = vld [vmem:[%s873_s0 + $0x8] sm:$0xff]  ;;  %607 = vset.pattern.permute.xlu0 %v654_v1  ;;  %v57_v2 = vld [vmem:[%s875_s2] sm:$0xff]  ;;  %608 = vset.pattern.permute.xlu1 %v654_v1 }
   0x2   :  { %85 = vmatpush.bf16.msra.mxu0 %v590_v0  ;;  %v589_v3 = vld [vmem:[%s873_s0] sm:$0xff]  ;;  %60 = vperm.xlu0 %607, %v57_v2  }
   0x3   :  { %20 = vsyncpa [#allocation3], 0  ;;  %609 = vset.pattern.permute.xlu2 %v654_v1  ;;  %v56_v4 = vld [vmem:[%s874_s1] sm:$0xf]  ;;  %vm75_vm0 = vcmask 261120   ;;  %s655_s2 = smov 64  }
   0x4   :  { %s656_s26 = smov 63   ;;  %v125_v10 = vld [vmem:[%s877_s4] sm:$0xff]  ;;  %v167_v11 = vld [vmem:[%s879_s6 + $0x10] sm:$0xff]  ;;  %v324_v13 = vld [vmem:[%s883_s10 + $0x8] sm:$0xff]  ;;  %vm93_vm1 = vcmask 1048064   ;;  %s657_s20 = smov 1  }
   0x5   :  { %v325_v12 = vld [vmem:[%s883_s10 + $0x10] sm:$0xff]  ;;  %v610_v16 = vld [vmem:[%s887_s14] ss:$0 sm:$0xff]  ;;  %s658_s21 = smov 62   ;;  %s659_s24 = smov 65   ;;  %vm142_vm2 = vcmask 1043456  }
   0x6   :  { %86 = vmatpush.bf16.msra.mxu0 %v589_v3  ;;  %v611_v21 = vld [vmem:[%s886_s13] ss:$0 sm:$0xff]  ;;  %vm138_vm3 = vcmask 195584   ;;  %v168_v33 = vld [vmem:[%s879_s6 + $0x18] sm:$0xff]  ;;  %v166_v34 = vld [vmem:[%s879_s6 + $0x8] sm:$0xff]  ;;  %vm199_vm4 = vcmask 64512  }
   0x7   :  { %v124_v31 = vld [vmem:[%s876_s3] sm:$0xf]  ;;  %v326_v38 = vld [vmem:[%s883_s10 + $0x18] sm:$0xff]  ;;  %v592_v46 = vld [vmem:[%s878_s5 + $0x8] sm:$0xff]  ;;  %vm262_vm5 = vcmask 523264   ;;  %vm360_vm6 = vcmask 1041408  }
   0x8   :  { %v165_v32 = vld [vmem:[%s879_s6] sm:$0xff]  ;;  %v596_v47 = vld [vmem:[%s885_s12 + $0x18] sm:$0xff]  ;;  %v595_v48 = vld [vmem:[%s885_s12 + $0x10] sm:$0xff]  ;;  %vm347_vm7 = vcmask 15360   ;;  %s660_s17 = smov [#allocation2]   ;;  %s527_s19 = sshll.u32 %s888_s15, 4  ;;  %s528_s19 = int_to_ptr.hbm [resolvable:$true] %s527_s19 }
   0x9   :  { %547 = vmatmul.msk.bf16.vlgmr.msra.gmra.mxu0 %vm75_vm0, %v56_v4  ;;  %v289_v39 = vld [vmem:[%s881_s8] sm:$0x3]  ;;  %273 = vmatpush.bf16.msra.mxu3 %v596_v47  ;;  %v594_v49 = vld [vmem:[%s885_s12 + $0x8] sm:$0xff]  ;;  %s525_s18 = sshll.u32 %s660_s17, 4  ;;  %s526_s18 = int_to_ptr.vmem [resolvable:$true] %s525_s18 }
   0xa   :  { %v591_v43 = vld [vmem:[%s878_s5] sm:$0xff] }
   0xb   :  { %v323_v45 = vld [vmem:[%s883_s10] sm:$0xff] }
   0xc   :  { %v593_v50 = vld [vmem:[%s885_s12] sm:$0xff] }
   0xd   :  { %274 = vmatpush.bf16.msra.mxu3 %v595_v48 }
  0x11   :  { %275 = vmatpush.bf16.msra.mxu3 %v594_v49 }
  0x15   :  { %276 = vmatpush.bf16.msra.mxu3 %v593_v50 }
  0x74   :  { %v61_v5 = vpop.permute.xlu0 %60 }
  0x86   :  { %v88_v6 = vpop.f32.mrf.mxu0 }
  0x87   :  { %v89_v7 = vadd.f32 %v88_v6, %v61_v5  ;;  %v288_v5 = vld [vmem:[%s880_s7] sm:$0x3] }
  0x88   :  { %v471_v6 = vld [vmem:[%s884_s11] sm:$0x3] }
  0x89   :  { %v92_v8 = vmax.f32 %v89_v7, 0.0  ;;  %v480_v7 = vsel %vm360_vm6, %v471_v6, 0 }
  0x8b   :  { %94 = vrot.lane.b32.xlu0 %v92_v8, %s655_s2 }
  0x8e   :  { %v90_v9 = vpop.f32.mrf.mxu0 }
  0x93   :  { %115 = vrot.lane.b32.xlu0 %v92_v8, %s656_s26 }
  0x9b   :  { %128 = vperm.xlu0 %607, %v125_v10  }
  0xa3   :  { %181 = vperm.xlu0 %607, %v167_v11  }
  0xab   :  { %339 = vperm.xlu0 %607, %v325_v12   ;;  %v319_v12 = vld [vmem:[%s882_s9] sm:$0xff] }
  0xb3   :  { %334 = vperm.xlu0 %607, %v324_v13   ;;  %v320_v13 = vld [vmem:[%s882_s9 + $0x8] sm:$0xff] }
  0xfd   :  { %v95_v14 = vpop.permute.xlu0 %94 }
  0xfe   :  { %v96_v15 = vsel %vm93_vm1, %v95_v14, %v92_v8  ;;  %v321_v14 = vld [vmem:[%s882_s9 + $0x10] sm:$0xff] }
  0xff   :  { %97 = vrot.lane.b32.xlu1 %v96_v15, %s655_s2  ;;  %v322_v15 = vld [vmem:[%s882_s9 + $0x18] sm:$0xff] }
 0x105   :  { %v116_v26 = vpop.permute.xlu0 %115 }
 0x107   :  { %110 = vrot.lane.b32.xlu1 %v610_v16, %s657_s20  ;;  %s662_s20 = smov 8  }
 0x10d   :  { %v129_v35 = vpop.permute.xlu0 %128 }
 0x115   :  { %v182_v59 = vpop.permute.xlu0 %181 }
 0x11d   :  { %v340_v16 = vpop.permute.xlu0 %339 }
 0x171   :  { %v98_v17 = vpop.permute.xlu1 %97 }
 0x172   :  { %v99_v18 = vsel %vm93_vm1, %v98_v17, %v92_v8 }
 0x179   :  { %v111_v19 = vpop.permute.xlu1 %110 }
 0x17a   :  { %v113_v20 = vmul.f32 %v111_v19, %v99_v18 }
 0x17c   :  { %119 = vrot.lane.b32.xlu2 %v113_v20, %s658_s21 }
 0x184   :  { %103 = vrot.lane.b32.xlu2 %v611_v21, %s656_s26  ;;  %v335_v21 = vpop.permute.xlu0 %334 }
 0x1d6   :  { %v120_v22 = vpop.permute.xlu2 %119 }
 0x1d7   :  { %v123_v23 = vpack.c.bf16 %v120_v22, %v120_v22 }
 0x1d9   :  { %135 = vrot.lane.b32.xlu1 %v123_v23, %s659_s24 }
 0x1de   :  { %v104_v24 = vpop.permute.xlu2 %103 }
 0x1df   :  { %v106_v25 = vmul.f32 %v104_v24, %v99_v18 }
 0x1e1   :  { %v122_v27 = vpack.c.bf16 %v116_v26, %v106_v25  ;;  %171 = vperm.xlu1 %608, %v165_v32  }
 0x1e3   :  { %133 = vrot.lane.b32.xlu2 %v122_v27, %s659_s24 }
 0x1e9   :  { %186 = vperm.xlu1 %608, %v168_v33  }
 0x1eb   :  { %176 = vperm.xlu2 %609, %v166_v34  }
 0x1f1   :  { %344 = vperm.xlu1 %608, %v326_v38  }
 0x1f3   :  { %292 = vperm.xlu2 %609, %v289_v39  }
 0x1fb   :  { %329 = vperm.xlu2 %609, %v323_v45  }
 0x23d   :  { %v134_v30 = vpop.permute.xlu2 %133 }
 0x245   :  { %v177_v52 = vpop.permute.xlu2 %176 }
 0x24b   :  { %v136_v28 = vpop.permute.xlu1 %135 }
 0x24c   :  { %v144_v29 = vsel %vm142_vm2, %v136_v28, 0 }
 0x24d   :  { %152 = vmatpush.bf16.msra.mxu1 %v144_v29  ;;  %v293_v8 = vpop.permute.xlu2 %292 }
 0x251   :  { %153 = vmatpush.bf16.msra.mxu1 %v134_v30 }
 0x253   :  { %v172_v53 = vpop.permute.xlu1 %171 }
 0x254   :  { %548 = vmatmul.msk.bf16.vlgmr.msra.gmra.mxu1 %vm138_vm3, %v124_v31 }
 0x255   :  { %v330_v17 = vpop.permute.xlu2 %329 }
 0x25b   :  { %v187_v60 = vpop.permute.xlu1 %186 }
 0x2d1   :  { %v155_v36 = vpop.f32.mrf.mxu1 }
 0x2d2   :  { %v156_v37 = vadd.f32 %v155_v36, %v129_v35  ;;  %v345_v35 = vpop.permute.xlu1 %344 }
 0x2d4   :  { %v159_v40 = vmax.f32 %v156_v37, 0.0 }
 0x2d6   :  { %v164_v41 = vpack.c.bf16 %v159_v40, %v159_v40 }
 0x2d8   :  { %v207_v42 = vsel %vm142_vm2, %v164_v41, 0 }
 0x2d9   :  { %v157_v44 = vpop.f32.mrf.mxu1  ;;  %216 = vmatpush.bf16.msra.mxu2 %v207_v42 }
 0x2dc   :  { %557 = vmatmul.msk.bf16.vlgmr.msra.gmra.mxu2 %vm199_vm4, %v591_v43 }
 0x2dd   :  { %597 = vmatpush.bf16.msrb.mxu2 %v480_v7 }
 0x2ec   :  { %558 = vmatmul.msk.bf16.gmra.mxu2 %vm199_vm4, %v592_v46 }
 0x35f   :  { %v218_v51 = vpop.f32.mrf.mxu2 }
 0x360   :  { %v815_v55 = vadd.f32 %v218_v51, %v172_v53 }
 0x367   :  { %v220_v54 = vpop.f32.mrf.mxu2 }
 0x368   :  { %v817_v56 = vadd.f32 %v220_v54, %v177_v52 }
 0x36a   :  { %v228_v57 = vpack.c.bf16 %v817_v56, %v815_v55 }
 0x36c   :  { %575 = vmatmul.msk.bf16.vlgmr.msra.gmra.mxu3 %vm262_vm5, %v228_v57 }
 0x36f   :  { %v223_v58 = vpop.f32.mrf.mxu2 }
 0x370   :  { %v822_v62 = vadd.f32 %v223_v58, %v182_v59 }
 0x377   :  { %v225_v61 = vpop.f32.mrf.mxu2 }
 0x378   :  { %v824_v63 = vadd.f32 %v225_v61, %v187_v60 }
 0x37a   :  { %v229_v0 = vpack.c.bf16 %v824_v63, %v822_v62 }
 0x37c   :  { %576 = vmatmul.msk.bf16.gmra.mxu3 %vm262_vm5, %v229_v0 }
 0x3ef   :  { %v278_v1 = vpop.f32.mrf.mxu3 }
 0x3f7   :  { %v280_v2 = vpop.f32.mrf.mxu3 }
 0x3ff   :  { %v283_v3 = vpop.f32.mrf.mxu3 }
 0x407   :  { %v285_v4 = vpop.f32.mrf.mxu3 }
 0x408   :  { %310 = vmatpush.msrb.mxu0 %v285_v4 }
 0x40a   :  { %311 = vmatpush.msrb.mxu0 %v283_v3 }
 0x40c   :  { %312 = vmatpush.msrb.mxu0 %v280_v2 }
 0x40e   :  { %313 = vmatpush.msrb.mxu0 %v278_v1 }
 0x40f   :  { %577 = vmatmul.msk.f32.vlgmr.msrb.gmra.mxu0 %vm75_vm0, %v288_v5  ;;  %vm472_vm0 = vcmask 31744  }
 0x410   :  { %489 = vmatpush.bf16.msra.mxu0 %v480_v7 }
 0x48c   :  { %v315_v9 = vpop.f32.mrf.mxu0 }
 0x48d   :  { %v316_v10 = vadd.f32 %v315_v9, %v293_v8 }
 0x48f   :  { %v318_v11 = vmax.f32 %v316_v10, 0.0 }
 0x491   :  { %578 = vmatpush.msk.msrb.mxu1 %vm360_vm6, %v318_v11 }
 0x492   :  { %579 = vmatmul.msk.f32.vlgmr.msrb.gmra.mxu1 %vm347_vm7, %v319_v12 }
 0x49a   :  { %580 = vmatmul.msk.f32.gmra.mxu1 %vm347_vm7, %v320_v13 }
 0x4a2   :  { %581 = vmatmul.msk.f32.gmra.mxu1 %vm347_vm7, %v321_v14 }
 0x4aa   :  { %582 = vmatmul.msk.f32.gmra.mxu1 %vm347_vm7, %v322_v15 }
 0x50f   :  { %v381_v18 = vpop.f32.mrf.mxu1 }
 0x510   :  { %v382_v19 = vadd.f32 %v381_v18, %v330_v17 }
 0x512   :  { %v583_v20 = vmul.f32 -1.442695, %v382_v19 }
 0x514   :  { %612 = vpow2.f32 %v583_v20 }
 0x517   :  { %v384_v22 = vpop.f32.mrf.mxu1 }
 0x518   :  { %v385_v23 = vadd.f32 %v384_v22, %v335_v21 }
 0x51a   :  { %v613_v24 = vpop.eup %612  ;;  %v584_v25 = vmul.f32 -1.442695, %v385_v23  ;;  %v52_v23 = vld [vmem:[%s873_s0] sm:$0xff]  }
 0x51b   :  { %v405_v26 = vadd.f32 1.0, %v613_v24  ;;  %v505_v24 = vunpack.c.l.bf16 %v52_v23 }
 0x51c   :  { %614 = vpow2.f32 %v584_v25 }
 0x51d   :  { %616 = vrcp.f32 %v405_v26  ;;  %vm414_vm9 = vweird.f32 %v405_v26  ;;  %v420_v46 = vand.u32 2147483648, %v405_v26  ;;  %v418_v49 = vand.u32 2147483647, %v405_v26 }
 0x51f   :  { %v387_v27 = vpop.f32.mrf.mxu1  ;;  %v421_v58 = vor.u32 1.1754944e-38, %v420_v46  ;;  %vm419_vm14 = vcmp.eq.f32.partialorder %v418_v49, 8.507059e+37 }
 0x520   :  { %v388_v28 = vadd.f32 %v387_v27, %v340_v16 }
 0x522   :  { %v615_v29 = vpop.eup %614  ;;  %v585_v30 = vmul.f32 -1.442695, %v388_v28 }
 0x523   :  { %v617_v31 = vpop.eup %616  ;;  %v406_v32 = vadd.f32 1.0, %v615_v29  ;;  %v506_v29 = vunpack.c.h.bf16 %v52_v23 }
 0x524   :  { %v410_v33 = vmul.f32 %v617_v31, %v405_v26  ;;  %618 = vpow2.f32 %v585_v30  ;;  %vm415_vm8 = vweird.f32 %v617_v31 }
 0x525   :  { %620 = vrcp.f32 %v406_v32  ;;  %v435_v47 = vand.u32 2147483648, %v406_v32  ;;  %v433_v50 = vand.u32 2147483647, %v406_v32  ;;  %vm848_vm11 = vmor %vm414_vm9, %vm415_vm8  ;;  %vm429_vm12 = vweird.f32 %v406_v32 }
 0x526   :  { %v411_v34 = vsub.f32 1.0, %v410_v33 }
 0x527   :  { %v390_v36 = vpop.f32.mrf.mxu1  ;;  %v436_v59 = vor.u32 1.1754944e-38, %v435_v47  ;;  %vm434_vm15 = vcmp.eq.f32.partialorder %v433_v50, 8.507059e+37 }
 0x528   :  { %v391_v37 = vadd.f32 %v390_v36, %v345_v35  ;;  %v412_v39 = vmul.f32 %v617_v31, %v411_v34  ;;  %v54_v34 = vld [vmem:[%s873_s0 + $0x8] sm:$0xff]   ;;  %s661_s0 = smov 128  }
 0x529   :  { %v507_v35 = vunpack.c.l.bf16 %v54_v34 }
 0x52a   :  { %v619_v38 = vpop.eup %618  ;;  %v586_v40 = vmul.f32 -1.442695, %v391_v37  ;;  %v413_v45 = vadd.f32 %v617_v31, %v412_v39  ;;  %v508_v39 = vunpack.c.h.bf16 %v54_v34 }
 0x52b   :  { %v621_v41 = vpop.eup %620  ;;  %v407_v42 = vadd.f32 1.0, %v619_v38 }
 0x52c   :  { %v425_v43 = vmul.f32 %v621_v41, %v406_v32  ;;  %622 = vpow2.f32 %v586_v40  ;;  %vm430_vm10 = vweird.f32 %v621_v41  ;;  %v417_v53 = vsel %vm848_vm11, %v617_v31, %v413_v45 }
 0x52d   :  { %624 = vrcp.f32 %v407_v42  ;;  %vm431_vm13 = vmor %vm429_vm12, %vm430_vm10  ;;  %v422_v1 = vsel %vm419_vm14, %v421_v58, %v417_v53  ;;  %vm444_vm2 = vweird.f32 %v407_v42  ;;  %v450_v10 = vand.u32 2147483648, %v407_v42 }
 0x52e   :  { %v426_v44 = vsub.f32 1.0, %v425_v43  ;;  %v448_v12 = vand.u32 2147483647, %v407_v42 }
 0x52f   :  { %v451_v17 = vor.u32 1.1754944e-38, %v450_v10 }
 0x530   :  { %v427_v48 = vmul.f32 %v621_v41, %v426_v44  ;;  %vm449_vm8 = vcmp.eq.f32.partialorder %v448_v12, 8.507059e+37 }
 0x532   :  { %v623_v52 = vpop.eup %622  ;;  %v428_v54 = vadd.f32 %v621_v41, %v427_v48 }
 0x533   :  { %v625_v57 = vpop.eup %624  ;;  %v408_v60 = vadd.f32 1.0, %v623_v52 }
 0x534   :  { %v440_v61 = vmul.f32 %v625_v57, %v407_v42  ;;  %v432_v0 = vsel %vm431_vm13, %v621_v41, %v428_v54  ;;  %vm445_vm1 = vweird.f32 %v625_v57 }
 0x535   :  { %626 = vrcp.f32 %v408_v60  ;;  %v437_v2 = vsel %vm434_vm15, %v436_v59, %v432_v0  ;;  %v465_v11 = vand.u32 2147483648, %v408_v60  ;;  %v463_v14 = vand.u32 2147483647, %v408_v60  ;;  %vm446_vm4 = vmor %vm444_vm2, %vm445_vm1 }
 0x536   :  { %v441_v3 = vsub.f32 1.0, %v440_v61  ;;  %v469_v4 = vpack.c.bf16 %v437_v2, %v422_v1  ;;  %vm459_vm6 = vweird.f32 %v408_v60 }
 0x537   :  { %v466_v18 = vor.u32 1.1754944e-38, %v465_v11  ;;  %vm464_vm9 = vcmp.eq.f32.partialorder %v463_v14, 8.507059e+37 }
 0x538   :  { %587 = vmatmul.msk.bf16.vlgmr.msra.gmra.mxu0 %vm472_vm0, %v469_v4  ;;  %v442_v5 = vmul.f32 %v625_v57, %v441_v3 }
 0x53a   :  { %v443_v9 = vadd.f32 %v625_v57, %v442_v5 }
 0x53b   :  { %v627_v6 = vpop.eup %626 }
 0x53c   :  { %v455_v7 = vmul.f32 %v627_v6, %v408_v60  ;;  %vm460_vm3 = vweird.f32 %v627_v6  ;;  %v447_v15 = vsel %vm446_vm4, %v625_v57, %v443_v9 }
 0x53d   :  { %vm461_vm7 = vmor %vm459_vm6, %vm460_vm3  ;;  %v452_v20 = vsel %vm449_vm8, %v451_v17, %v447_v15 }
 0x53e   :  { %v456_v8 = vsub.f32 1.0, %v455_v7 }
 0x540   :  { %v457_v13 = vmul.f32 %v627_v6, %v456_v8 }
 0x542   :  { %v458_v16 = vadd.f32 %v627_v6, %v457_v13 }
 0x544   :  { %v462_v19 = vsel %vm461_vm7, %v627_v6, %v458_v16 }
 0x545   :  { %v467_v21 = vsel %vm464_vm9, %v466_v18, %v462_v19 }
 0x546   :  { %v470_v22 = vpack.c.bf16 %v467_v21, %v452_v20 }
 0x548   :  { %588 = vmatmul.msk.bf16.vlgmr.msrb.gmra.mxu2 %vm472_vm0, %v470_v22 }
 0x5b5   :  { %v491_v25 = vpop.f32.mrf.mxu0 }
 0x5b6   :  { %v501_v26 = vmul.f32 %v491_v25, %v815_v55 }
 0x5b8   :  { %v509_v27 = vadd.f32 %v505_v24, %v501_v26 }
 0x5ba   :  { %v513_v28 = vmax.f32 %v509_v27, 0.0 }
 0x5bc   :  { %517 = vst.msk [vmem:[#allocation2] sm:$0xff] %vm262_vm5, %v513_v28 }
 0x5bd   :  { %v493_v30 = vpop.f32.mrf.mxu0 }
 0x5be   :  { %v502_v31 = vmul.f32 %v493_v30, %v817_v56 }
 0x5c0   :  { %v510_v32 = vadd.f32 %v506_v29, %v502_v31 }
 0x5c2   :  { %v514_v33 = vmax.f32 %v510_v32, 0.0 }
 0x5c4   :  { %518 = vst.msk [vmem:[#allocation2 + $0x8] sm:$0xff] %vm262_vm5, %v514_v33 }
 0x5cb   :  { %v496_v36 = vpop.f32.mrf.mxu2 }
 0x5cc   :  { %v503_v55 = vmul.f32 %v496_v36, %v822_v62 }
 0x5ce   :  { %v511_v37 = vadd.f32 %v507_v35, %v503_v55 }
 0x5d0   :  { %v515_v38 = vmax.f32 %v511_v37, 0.0 }
 0x5d2   :  { %519 = vst.msk [vmem:[#allocation2 + $0x10] sm:$0xff] %vm262_vm5, %v515_v38 }
 0x5d3   :  { %v498_v40 = vpop.f32.mrf.mxu2 }
 0x5d4   :  { %v504_v56 = vmul.f32 %v498_v40, %v824_v63 }
 0x5d6   :  { %v512_v41 = vadd.f32 %v508_v39, %v504_v56 }
 0x5d8   :  { %v516_v42 = vmax.f32 %v512_v41, 0.0 }
 0x5da   :  { %520 = vst.msk [vmem:[#allocation2 + $0x18] sm:$0xff] %vm262_vm5, %v516_v42 }
 0x5db   :  { %533 = dma.vmem_to_hbm [thread:$0]  %s526_s18, 512, %s528_s19, [#allocation3], %s661_s0, %s661_s0, %s662_s20  }
 0x5dc   :  { %652 = dma.done.wait [#allocation3], 512  }
 0x5dd   :  { %653 = vsyncadd [#allocation3], 4294966784 }
 0x5de   :  { %538 = vsyncpa [#allocation3], 1 }

</bundles_post_ra>
